<compile_context>
chip_gen: v7x
topology: tpu7x:2x2x1
jax: 0.10.0
libtpu: 0.0.40
codegen_flags: <defaults>
</compile_context>

<pallas_src>
import jax
import jax.numpy as jnp
from jax import lax
from jax.experimental import pallas as pl
from jax.experimental.pallas import tpu as pltpu

VOCAB_SIZE = 128
EMBEDDING_DIM = 64
CONTEXT_SIZE = 2
HIDDEN = 128
MAX_TILE_B = 1024     # upper bound on the batch tile (multiple of 8 sublanes)


def ngram_kernel(idx_ref, table_ref, b1_ref, w2_ref, b2_ref, out_ref):
    tile_b, context = idx_ref.shape
    k_fused = table_ref.shape[0]            # CONTEXT * VOCAB
    vocab = k_fused // context

    idx = idx_ref[...]                      # (tile_b, CONTEXT) int32
    iota = lax.broadcasted_iota(jnp.int32, (tile_b, k_fused), 1)

    # One (tile_b, CONTEXT*VOCAB) one-hot selecting the CONTEXT rows of the
    # fused table; context t's id is offset by t*VOCAB.  Invalid ids -> no hit.
    hit = jnp.zeros((tile_b, k_fused), dtype=jnp.bool_)
    for t in range(context):                # static, unrolled (CONTEXT=2)
        ids = idx[:, t:t + 1]               # (tile_b, 1)
        valid = (ids >= 0) & (ids < vocab)
        hit = hit | ((iota == ids + t * vocab) & valid)
    onehot = hit.astype(table_ref.dtype)    # 0/1 is exact in bf16

    # Fused embedding-gather + linear1 (+ dropout == identity at inference),
    # single K=256 MXU matmul, f32 accumulation, then bias + ReLU in f32.
    h = jnp.dot(onehot, table_ref[...], preferred_element_type=jnp.float32)
    h = jnp.maximum(h + b1_ref[...], 0.0)

    # linear2, f32 accumulation + f32 bias.
    logits = jnp.dot(h.astype(w2_ref.dtype), w2_ref[...],
                     preferred_element_type=jnp.float32) + b2_ref[...]

    # log_softmax over dim=-1 (numerically stable, f32 epilogue).
    m = jnp.max(logits, axis=-1, keepdims=True)
    s = logits - m
    lse = jnp.log(jnp.sum(jnp.exp(s), axis=-1, keepdims=True))
    out_ref[...] = (s - lse).astype(out_ref.dtype)


def _choose_tile_b(batch, max_tile_b=MAX_TILE_B):
    """Batch tile: >=2 balanced tiles when possible (v7x megacore), capped at
    max_tile_b, rounded up to a multiple of 8 sublanes."""
    target = pl.cdiv(batch, 2) if batch > 16 else batch
    tile = min(max_tile_b, target)
    return max(8, ((tile + 7) // 8) * 8)


def ngram_forward(indices, emb, w1, b1, w2, b2, *,
                  weight_dtype=jnp.bfloat16, out_dtype=jnp.float32,
                  max_tile_b=MAX_TILE_B):
    """Batched forward.  `indices` is (B, CONTEXT) or (CONTEXT,) int; weights
    are row-major "in x out" (PyTorch weight.T).  Returns (B, VOCAB) log-probs
    in `out_dtype` (or (1, VOCAB) for a single context)."""
    if indices.ndim == 1:
        indices = indices[None, :]
    indices = indices.astype(jnp.int32)
    b = indices.shape[0]

    tile_b = _choose_tile_b(b, max_tile_b)
    num_tiles = pl.cdiv(b, tile_b)
    b_pad = num_tiles * tile_b
    if b_pad != b:
        indices = jnp.pad(indices, ((0, b_pad - b), (0, 0)))

    # Fused gather+linear1 table: T[t*VOCAB + v, :] = emb[v] @ W1[t-block].
    # Precomputed in f32, rounded once to the MXU weight dtype.
    emb_f32 = emb.astype(jnp.float32)
    w1_f32 = w1.astype(jnp.float32)
    parts = [emb_f32 @ w1_f32[t * EMBEDDING_DIM:(t + 1) * EMBEDDING_DIM, :]
             for t in range(CONTEXT_SIZE)]
    table = jnp.concatenate(parts, axis=0).astype(weight_dtype)  # (256, 128)
    w2c = w2.astype(weight_dtype)
    b1c = b1.astype(jnp.float32).reshape(1, HIDDEN)
    b2c = b2.astype(jnp.float32).reshape(1, VOCAB_SIZE)

    out = pl.pallas_call(
        ngram_kernel,
        out_shape=jax.ShapeDtypeStruct((b_pad, VOCAB_SIZE), out_dtype),
        grid=(num_tiles,),
        in_specs=[
            # token ids: streamed per batch tile
            pl.BlockSpec((tile_b, CONTEXT_SIZE), lambda i: (i, 0)),
            # fused table / biases / W2: VMEM-resident across the whole grid
            pl.BlockSpec((CONTEXT_SIZE * VOCAB_SIZE, HIDDEN), lambda i: (0, 0)),
            pl.BlockSpec((1, HIDDEN), lambda i: (0, 0)),
            pl.BlockSpec((HIDDEN, VOCAB_SIZE), lambda i: (0, 0)),
            pl.BlockSpec((1, VOCAB_SIZE), lambda i: (0, 0)),
        ],
        out_specs=pl.BlockSpec((tile_b, VOCAB_SIZE), lambda i: (i, 0)),
        compiler_params=pltpu.CompilerParams(
            dimension_semantics=("parallel",)),
    )(indices, table, b1c, w2c, b2c)
    return out[:b]


def reference_forward(indices, emb, w1, b1, w2, b2):
    # Pure-JAX f32 reference mirroring the PyTorch module (eval mode), batched.
    if indices.ndim == 1:
        indices = indices[None, :]
    embeds = jnp.take(emb, indices, axis=0).reshape(indices.shape[0], -1)
    out = jax.nn.relu(embeds @ w1 + b1)
    out = out @ w2 + b2
    return jax.nn.log_softmax(out, axis=-1)


if __name__ == "__main__":
    key = jax.random.PRNGKey(0)
    k_emb, k_w1, k_b1, k_w2, k_b2, k_idx = jax.random.split(key, 6)

    # Deterministic parameter init (roughly PyTorch-default scale), f32 master.
    emb = jax.random.normal(k_emb, (VOCAB_SIZE, EMBEDDING_DIM), jnp.float32)
    lim1 = 1.0 / (CONTEXT_SIZE * EMBEDDING_DIM) ** 0.5
    w1 = jax.random.uniform(k_w1, (CONTEXT_SIZE * EMBEDDING_DIM, HIDDEN),
                            jnp.float32, -lim1, lim1)
    b1 = jax.random.uniform(k_b1, (1, HIDDEN), jnp.float32, -lim1, lim1)
    lim2 = 1.0 / HIDDEN ** 0.5
    w2 = jax.random.uniform(k_w2, (HIDDEN, VOCAB_SIZE), jnp.float32, -lim2, lim2)
    b2 = jax.random.uniform(k_b2, (1, VOCAB_SIZE), jnp.float32, -lim2, lim2)

    # A batch of contexts (each row = one n-gram "inputs" of the module).
    B = 256
    indices = jax.random.randint(k_idx, (B, CONTEXT_SIZE), 0, VOCAB_SIZE, jnp.int32)
    ref = reference_forward(indices, emb, w1, b1, w2, b2)

    # f32-weight path: tight check against the pure-JAX reference.
    out_f32 = jax.block_until_ready(
        ngram_forward(indices, emb, w1, b1, w2, b2, weight_dtype=jnp.float32))
    assert out_f32.shape == (B, VOCAB_SIZE)
    assert jnp.allclose(out_f32, ref, atol=1e-4, rtol=1e-4)

    # bf16-weight path (recommended perf config): loosened tolerance, since
    # weights are rounded to bf16 (accumulation/epilogue remain f32).
    out_bf16 = jax.block_until_ready(
        ngram_forward(indices, emb, w1, b1, w2, b2, weight_dtype=jnp.bfloat16))
    assert out_bf16.shape == (B, VOCAB_SIZE)
    assert jnp.allclose(out_bf16, ref, atol=3e-2, rtol=3e-2)

    # Single-context path (original module signature: inputs of shape (CONTEXT,)).
    single = jax.block_until_ready(
        ngram_forward(indices[0], emb, w1, b1, w2, b2, weight_dtype=jnp.float32))
    assert single.shape == (1, VOCAB_SIZE)
    assert jnp.allclose(single, ref[0:1], atol=1e-4, rtol=1e-4)

    print("KERNEL_OK")
</pallas_src>

<mosaic_0001>
module attributes {stable_mosaic.version = 11 : i64} {
  func.func @ngram_kernel(%arg0: i32, %arg1: memref<128x2xi32, #tpu.memory_space<vmem>>, %arg2: memref<256x128xf32, #tpu.memory_space<vmem>>, %arg3: memref<1x128xf32, #tpu.memory_space<vmem>>, %arg4: memref<128x128xf32, #tpu.memory_space<vmem>>, %arg5: memref<1x128xf32, #tpu.memory_space<vmem>>, %arg6: memref<128x128xf32, #tpu.memory_space<vmem>>) attributes {dimension_semantics = [#tpu.dimension_semantics<parallel>], iteration_bounds = array<i64: 2>, scalar_prefetch = 0 : i64, scratch_operands = 0 : i64, tpu.core_type = #tpu.core_type<tc>, window_params = [{transform_indices = @transform_0, window_bounds = array<i64: 128, 2>}, {pipeline_mode = #tpu.pipeline_mode<synchronous>, transform_indices = @transform_1, window_bounds = array<i64: 256, 128>}, {pipeline_mode = #tpu.pipeline_mode<synchronous>, transform_indices = @transform_2, window_bounds = array<i64: 1, 128>}, {pipeline_mode = #tpu.pipeline_mode<synchronous>, transform_indices = @transform_3, window_bounds = array<i64: 128, 128>}, {pipeline_mode = #tpu.pipeline_mode<synchronous>, transform_indices = @transform_4, window_bounds = array<i64: 1, 128>}, {transform_indices = @transform_5, window_bounds = array<i64: 128, 128>}]} {
    %c0 = arith.constant 0 : index
    %c0_0 = arith.constant 0 : index
    %0 = vector.load %arg1[%c0, %c0_0] : memref<128x2xi32, #tpu.memory_space<vmem>>, vector<128x2xi32>
    %1 = tpu.iota {dimensions = array<i32: 1>} : vector<128x256xi32>
    %false = arith.constant false
    %2 = vector.broadcast %false : i1 to vector<128x256xi1>
    %3 = vector.extract_strided_slice %0 {offsets = [0, 0], sizes = [128, 1], strides = [1, 1]} : vector<128x2xi32> to vector<128x1xi32>
    %c0_i32 = arith.constant 0 : i32
    %4 = vector.broadcast %c0_i32 : i32 to vector<128x1xi32>
    %5 = arith.cmpi sge, %3, %4 : vector<128x1xi32>
    %c128_i32 = arith.constant 128 : i32
    %6 = vector.broadcast %c128_i32 : i32 to vector<128x1xi32>
    %7 = arith.cmpi slt, %3, %6 : vector<128x1xi32>
    %8 = arith.andi %5, %7 : vector<128x1xi1>
    %c0_i32_1 = arith.constant 0 : i32
    %9 = vector.broadcast %c0_i32_1 : i32 to vector<128x1xi32>
    %10 = arith.addi %3, %9 : vector<128x1xi32>
    %11 = vector.broadcast %10 : vector<128x1xi32> to vector<128x256xi32>
    %12 = arith.cmpi eq, %1, %11 : vector<128x256xi32>
    %13 = vector.broadcast %8 : vector<128x1xi1> to vector<128x256xi1>
    %14 = arith.andi %12, %13 : vector<128x256xi1>
    %15 = arith.ori %2, %14 : vector<128x256xi1>
    %16 = vector.extract_strided_slice %0 {offsets = [0, 1], sizes = [128, 1], strides = [1, 1]} : vector<128x2xi32> to vector<128x1xi32>
    %c0_i32_2 = arith.constant 0 : i32
    %17 = vector.broadcast %c0_i32_2 : i32 to vector<128x1xi32>
    %18 = arith.cmpi sge, %16, %17 : vector<128x1xi32>
    %c128_i32_3 = arith.constant 128 : i32
    %19 = vector.broadcast %c128_i32_3 : i32 to vector<128x1xi32>
    %20 = arith.cmpi slt, %16, %19 : vector<128x1xi32>
    %21 = arith.andi %18, %20 : vector<128x1xi1>
    %c128_i32_4 = arith.constant 128 : i32
    %22 = vector.broadcast %c128_i32_4 : i32 to vector<128x1xi32>
    %23 = arith.addi %16, %22 : vector<128x1xi32>
    %24 = vector.broadcast %23 : vector<128x1xi32> to vector<128x256xi32>
    %25 = arith.cmpi eq, %1, %24 : vector<128x256xi32>
    %26 = vector.broadcast %21 : vector<128x1xi1> to vector<128x256xi1>
    %27 = arith.andi %25, %26 : vector<128x256xi1>
    %28 = arith.ori %15, %27 : vector<128x256xi1>
    %29 = arith.extui %28 : vector<128x256xi1> to vector<128x256xi32>
    %30 = arith.sitofp %29 : vector<128x256xi32> to vector<128x256xf32>
    %c0_5 = arith.constant 0 : index
    %c0_6 = arith.constant 0 : index
    %31 = vector.load %arg2[%c0_5, %c0_6] : memref<256x128xf32, #tpu.memory_space<vmem>>, vector<256x128xf32>
    %cst = arith.constant dense<0.000000e+00> : vector<128x128xf32>
    %32 = tpu.matmul %30, %31, %cst {dimension_numbers = #tpu.dot_dimension_numbers<[1], [0], [0], [1], [0, 0, 1, 1], [], []>} : vector<128x256xf32>, vector<256x128xf32>, vector<128x128xf32> -> vector<128x128xf32>
    %c0_7 = arith.constant 0 : index
    %c0_8 = arith.constant 0 : index
    %33 = vector.load %arg3[%c0_7, %c0_8] : memref<1x128xf32, #tpu.memory_space<vmem>>, vector<1x128xf32>
    %34 = vector.broadcast %33 : vector<1x128xf32> to vector<128x128xf32>
    %35 = arith.addf %32, %34 : vector<128x128xf32>
    %cst_9 = arith.constant 0.000000e+00 : f32
    %36 = vector.broadcast %cst_9 : f32 to vector<128x128xf32>
    %37 = arith.maximumf %35, %36 : vector<128x128xf32>
    %c0_10 = arith.constant 0 : index
    %c0_11 = arith.constant 0 : index
    %38 = vector.load %arg4[%c0_10, %c0_11] : memref<128x128xf32, #tpu.memory_space<vmem>>, vector<128x128xf32>
    %cst_12 = arith.constant dense<0.000000e+00> : vector<128x128xf32>
    %39 = tpu.matmul %37, %38, %cst_12 {dimension_numbers = #tpu.dot_dimension_numbers<[1], [0], [0], [1], [0, 0, 1, 1], [], []>} : vector<128x128xf32>, vector<128x128xf32>, vector<128x128xf32> -> vector<128x128xf32>
    %c0_13 = arith.constant 0 : index
    %c0_14 = arith.constant 0 : index
    %40 = vector.load %arg5[%c0_13, %c0_14] : memref<1x128xf32, #tpu.memory_space<vmem>>, vector<1x128xf32>
    %41 = vector.broadcast %40 : vector<1x128xf32> to vector<128x128xf32>
    %42 = arith.addf %39, %41 : vector<128x128xf32>
    %cst_15 = arith.constant dense<0xFF800000> : vector<128xf32>
    %43 = vector.multi_reduction <maximumf>, %42, %cst_15 [1] : vector<128x128xf32> to vector<128xf32>
    %44 = vector.shape_cast %43 : vector<128xf32> to vector<128x1xf32>
    %45 = vector.broadcast %44 : vector<128x1xf32> to vector<128x128xf32>
    %46 = arith.subf %42, %45 : vector<128x128xf32>
    %47 = math.exp %46 : vector<128x128xf32>
    %cst_16 = arith.constant dense<0.000000e+00> : vector<128xf32>
    %48 = vector.multi_reduction <add>, %47, %cst_16 [1] : vector<128x128xf32> to vector<128xf32>
    %49 = vector.shape_cast %48 : vector<128xf32> to vector<128x1xf32>
    %50 = math.log %49 : vector<128x1xf32>
    %51 = vector.broadcast %50 : vector<128x1xf32> to vector<128x128xf32>
    %52 = arith.subf %46, %51 : vector<128x128xf32>
    %c0_17 = arith.constant 0 : index
    %c0_18 = arith.constant 0 : index
    %53 = vector.load %arg6[%c0_17, %c0_18] : memref<128x128xf32, #tpu.memory_space<vmem>>, vector<128x128xf32>
    tpu.vector_store %arg6[%c0_17, %c0_18], %52 {strides = array<i32>} : memref<128x128xf32, #tpu.memory_space<vmem>>, vector<128x128xf32>,
    return
  }
  func.func @transform_0(%arg0: i32) -> (i32, i32) {
    %c0_i32 = arith.constant 0 : i32
    %c0_i32_0 = arith.constant 0 : i32
    return %arg0, %c0_i32 : i32, i32
  }
  func.func @transform_1(%arg0: i32) -> (i32, i32) {
    %c0_i32 = arith.constant 0 : i32
    %c0_i32_0 = arith.constant 0 : i32
    %c0_i32_1 = arith.constant 0 : i32
    return %c0_i32, %c0_i32_0 : i32, i32
  }
  func.func @transform_2(%arg0: i32) -> (i32, i32) {
    %c0_i32 = arith.constant 0 : i32
    %c0_i32_0 = arith.constant 0 : i32
    %c0_i32_1 = arith.constant 0 : i32
    return %c0_i32, %c0_i32_0 : i32, i32
  }
  func.func @transform_3(%arg0: i32) -> (i32, i32) {
    %c0_i32 = arith.constant 0 : i32
    %c0_i32_0 = arith.constant 0 : i32
    %c0_i32_1 = arith.constant 0 : i32
    return %c0_i32, %c0_i32_0 : i32, i32
  }
  func.func @transform_4(%arg0: i32) -> (i32, i32) {
    %c0_i32 = arith.constant 0 : i32
    %c0_i32_0 = arith.constant 0 : i32
    %c0_i32_1 = arith.constant 0 : i32
    return %c0_i32, %c0_i32_0 : i32, i32
  }
  func.func @transform_5(%arg0: i32) -> (i32, i32) {
    %c0_i32 = arith.constant 0 : i32
    %c0_i32_0 = arith.constant 0 : i32
    return %arg0, %c0_i32 : i32, i32
  }
}

</mosaic_0001>

<bundles_post_ra>
// kernel: tpu_custom_call.1
= control target key start
LH: loop header
LB: loop body
LE: loop exit
PB: predicated region body
PF: predicated region fallthrough
CT: control target
= control target key end

     0   :  { %10 = vsyncpa [#allocation3], 0  ;;  %s2846_s0 = inlined_call_operand.vmem [shape: s32[256,2], index: 0, kind: input, shape index: {}]   ;;  %s2847_s1 = inlined_call_operand.vmem [shape: f32[256,128], index: 1, kind: input, shape index: {}]   ;;  %s2848_s2 = inlined_call_operand.vmem [shape: f32[1,128], index: 2, kind: input, shape index: {}]   ;;  %s2849_s3 = inlined_call_operand.hbm [shape: f32[128,128], index: 3, kind: input, shape index: {}]   ;;  %s2850_s4 = inlined_call_operand.vmem [shape: f32[1,128], index: 4, kind: input, shape index: {}]   ;;  %s2851_s5 = inlined_call_operand.hbm [shape: f32[256,128], index: 5, kind: output, shape index: {}]  }
   0x1   :  { %11 = vsyncpa [#allocation4], 0 }
   0x2   :  { %13 = vsyncpa [#allocation4 + $0x1], 0  ;;  %s2023_s18 = smov 0   ;;  %s2025_s19 = smov 0  }
   0x3   :  { %s2027_s20 = smov 0   ;;  %s2029_s21 = smov 0  }
   0x4 LB: > { %s2044_s22 = sadd.s32 4294967295, %s1982_s21   ;;  %s1420_s23 = sadd.s32 4294967294, %s1982_s21   ;;  %s1982_s21 = sphi %s2029_s21, %s2918_s21   ;;  %s1978_s20 = sphi %s2027_s20, %s2917_s20   ;;  %s1974_s19 = sphi %s2025_s19, %s2916_s19   ;;  %s1970_s18 = sphi %s2023_s18, %s2915_s18  }
   0x5   : > { %s2048_s24 = sadd.s32 1, %s1982_s21   ;;  %s136_s25 = sadd.s32 1, %s1978_s20 }
   0x6   : > { %s133_s26 = ssub.s32 %s1982_s21, %s2048_s24  ;;  %p146_p0 = scmp.ne.s32.totalorder %s1978_s20, %s1974_s19 }
   0x7   : > { %p134_p1 = scmp.eq.s32.totalorder %s133_s26, 0  ;;  %p147_p2 = scmp.eq.s32.totalorder %s2044_s22, 1 }
   0x8   : > { %p152_p3 = scmp.ne.s32.totalorder %s1974_s19, %s1970_s18  ;;  %p153_p4 = scmp.eq.s32.totalorder %s1420_s23, 1 }
   0x9   : > { %s2059_s27 = scalar_select %p134_p1, %s1978_s20, %s136_s25  }
   0xa   : > { %p2061_p5 = por %p147_p2, %p146_p0  ;;  %p2065_p6 = por %p153_p4, %p152_p3 }
   0xb   : > { %p1421_p7 = scmp.ge.s32.totalorder %s1982_s21, 1  ;;  %p160_p8 = scmp.lt.s32.totalorder %s1982_s21, 3 }
   0xc   : > { %s2855_s28 = scalar_select %p2061_p5, 1, 0 }
   0xd   : > { %s2856_s29 = scalar_select %p2065_p6, 1, 0 }
   0xe   : > { %p2852_p9 = scmp.eq.s32.totalorder %s2044_s22, 0  ;;  %p2072_p10 = pnand %p1421_p7, %p160_p8 }
   0xf   : > { %s1984_s6 = smov [#allocation2]   ;;  %s1888_s11 = scalar_lea.hbm %s2849_s3, 2048 }
  0x10   : > { %s2857_s30 = scalar_select %p2072_p10, 1, 0 }
  0x11   : > { %s178_s7 = sshll.u32 %s1984_s6, 4  ;;  %p1739_p11 = pneg %p2072_p10  ;;  %s179_s7 = int_to_ptr.vmem [resolvable:$true] %s178_s7 }
  0x12   : > { %p1889_p13 = scmp.ne.s32.totalorder %s2849_s3, %s1888_s11  ;;  %p1895_p3 = scmp.lt.u32.totalorder %s1888_s11, %s2849_s3 }
  0x13   : > { %p2080_p12 = pnand %p2852_p9, %p1739_p11 }
  0x15   : > { %p1890_p0 = pneg %p2080_p12 }
  0x17   : > { %p1891_p1 = pnand %p1890_p0, %p1889_p13 }
  0x19   : > { %p1892_p2 = pneg %p1891_p1 }
  0x1b   : > { %p1897_p4 = pnand %p1895_p3, %p1892_p2 }
  0x1d   : > { %1900 = shalt.err (!%p1897_p4)
}
  0x1e   : > { %s1901_s16 = scalar_lea.vmem %s179_s7, 2048  ;;  %p1909_p9 = scmp.lt.s32.totalorder %s179_s7, %s179_s7 }
  0x1f   : > { %p1902_p7 = scmp.ne.s32.totalorder %s179_s7, %s1901_s16  ;;  %p1910_p6 = scmp.lt.s32.totalorder %s1901_s16, %s1901_s16 }
  0x21   : > { %p1904_p8 = pnand %p1902_p7, %p1890_p0  ;;  %p1911_p5 = por %p1910_p6, %p1909_p9 }
  0x23   : > { %p1905_p11 = pneg %p1904_p8 }
  0x25   : > { %p1912_p10 = pnand %p1911_p5, %p1905_p11 }
  0x27   : > { %1915 = shalt.err (!%p1912_p10)
}
  0x28   : > { %s1985_s17 = smov 128   ;;  %s1986_s23 = smov 8  }
  0x29   : > { %1742 = dma.hbm_to_vmem [thread:$0]  (!%p2080_p12), %s2849_s3, 2048, %s179_s7, [#allocation3], %s1985_s17, %s1985_s17, %s1986_s23  }
  0x2a   : > { %p2859_p13 = scmp.ne.s32.totalorder %s2857_s30, 0 }
  0x2b   : > { %p2860_p1 = scmp.eq.s32.totalorder (!%p2859_p13), %s2044_s22, 0 }
  0x2c   : > { %206 = sbr.rel (%p2859_p13) target bundleno = 1140 (0x474), region = 40 }
  0x33   : > { %1961 = dma.done.wait (%p2860_p1), [#allocation3], 2048   ;;  %p2861_p0 = pmov %p2860_p1 }
  0x34   : > { %s1427_s6 = sshll.u32 %s2044_s22, 4  ;;  %v1987_v0 = vmov 1   ;;  %v1988_v7 = vmov 0   ;;  %v804_v13 = vld [vmem:[%s2847_s1 + $0x80] sm:$0xff]  ;;  %v805_v14 = vld [vmem:[%s2847_s1 + $0x88] sm:$0xff]  ;;  %v806_v18 = vld [vmem:[%s2847_s1 + $0x90] sm:$0xff] }
  0x35   : > { %1963 = vsyncadd (%p2861_p0), [#allocation3], 4294965248  ;;  %1791 = vset.pattern.permute.xlu0 %v1987_v0  ;;  %1790 = vset.pattern.permute.xlu1 %v1987_v0  ;;  %p235_p5 = scmp.lt.s32.totalorder %s1427_s6, 31  ;;  %v788_v15 = vld [vmem:[%s2847_s1] sm:$0xff]  ;;  %v789_v17 = vld [vmem:[%s2847_s1 + $0x8] sm:$0xff]  ;;  %v1669_v21 = vpack.c.bf16 %v805_v14, %v804_v13  ;;  %s231_s17 = sand.u32 1, %s1974_s19  }
  0x36   : > { %v807_v19 = vld [vmem:[%s2847_s1 + $0x98] sm:$0xff]  ;;  %v1671_v22 = vpack.c.bf16 %v789_v17, %v788_v15  ;;  %v790_v24 = vld [vmem:[%s2847_s1 + $0x10] sm:$0xff]  ;;  %v808_v27 = vld [vmem:[%s2847_s1 + $0xa0] sm:$0xff]  ;;  %s1426_s23 = sshll.u32 %s231_s17, 7  ;;  %s1500_s26 = sshll.u32 %s2044_s22, 11 }
  0x37   : > { %s2920_s6 = smov (!%p235_p5, %s1427_s6), 31  ;;  %v1673_v23 = vpack.c.bf16 %v807_v19, %v806_v18  ;;  %v791_v25 = vld [vmem:[%s2847_s1 + $0x18] sm:$0xff]  ;;  %v809_v28 = vld [vmem:[%s2847_s1 + $0xa8] sm:$0xff]  ;;  %1670 = vmatprep.subr.bf16.mxu0 %v1669_v21  ;;  %v792_v32 = vld [vmem:[%s2847_s1 + $0x20] sm:$0xff]  ;;  %s2762_s25 = scalar_lea.vmem [#allocation5], %s1426_s23 }
  0x38   : > { %s1428_s8 = sshll.u32 %s2920_s6, 3  ;;  %1672 = vmatpush3.bf16.msra.mxu0 %v1671_v22  ;;  %v1675_v30 = vpack.c.bf16 %v791_v25, %v790_v24  ;;  %v1677_v31 = vpack.c.bf16 %v809_v28, %v808_v27  ;;  %v793_v33 = vld [vmem:[%s2847_s1 + $0x28] sm:$0xff]  ;;  %v810_v36 = vld [vmem:[%s2847_s1 + $0xb0] sm:$0xff]  ;;  %v811_v37 = vld [vmem:[%s2847_s1 + $0xb8] sm:$0xff]  ;;  %s1346_s6 = sshll.u32 %s2762_s25, 4  ;;  %s2798_s6 = int_to_ptr.vmem [resolvable:$true] %s1346_s6 }
  0x39   : > { %s2112_s30 = scalar_lea.vmem %s2846_s0, %s1428_s8  ;;  %1674 = vmatprep.subr.bf16.mxu0 %v1673_v23  ;;  %v1679_v39 = vpack.c.bf16 %v793_v33, %v792_v32  ;;  %v1681_v40 = vpack.c.bf16 %v811_v37, %v810_v36  ;;  %v794_v41 = vld [vmem:[%s2847_s1 + $0x30] sm:$0xff]  ;;  %v795_v42 = vld [vmem:[%s2847_s1 + $0x38] sm:$0xff]  ;;  %v812_v45 = vld [vmem:[%s2847_s1 + $0xc0] sm:$0xff]  ;;  %s2796_s9 = scalar_lea.hbm %s2851_s5, %s1500_s26 }
  0x3a   : > { %v2115_v1 = vld [vmem:[%s2112_s30 + $0x8] sm:$0xff]  ;;  %v2118_v2 = vld [vmem:[%s2112_s30] sm:$0xff]  ;;  %v2121_v3 = vld [vmem:[%s2112_s30 + $0x18] sm:$0xff]  ;;  %v1683_v47 = vpack.c.bf16 %v795_v42, %v794_v41  ;;  %s2805_s22 = scalar_lea.sflag [#allocation4], %s231_s17  ;;  %s1916_s10 = scalar_lea.vmem %s2798_s6, 2048 }
  0x3b   : > { %v501_v4 = vadd.s32 128, %v2115_v1  ;;  %v500_v5 = vadd.s32 128, %v2118_v2  ;;  %vm260_vm0 = vcmp.ge.s32.totalorder %v2118_v2, 0  ;;  %vm276_vm1 = vcmp.lt.s32.totalorder %v2118_v2, 128  ;;  %v2134_v9 = vld [vmem:[%s2112_s30 + $0x28] sm:$0xff]  ;;  %v2139_v11 = vld [vmem:[%s2112_s30 + $0x38] sm:$0xff]  ;;  %p1917_p6 = scmp.ne.s32.totalorder %s2798_s6, %s1916_s10 }
  0x3c   : > { %v503_v6 = vadd.s32 128, %v2121_v3  ;;  %vm292_vm2 = vmand %vm260_vm0, %vm276_vm1  ;;  %vm261_vm3 = vcmp.ge.s32.totalorder %v2115_v1, 0  ;;  %vm277_vm4 = vcmp.lt.s32.totalorder %v2115_v1, 128  ;;  %v505_v10 = vadd.s32 128, %v2134_v9  ;;  %v2163_v20 = vld [vmem:[%s2112_s30 + $0x48] sm:$0xff]  ;;  %v2180_v29 = vld [vmem:[%s2112_s30 + $0x58] sm:$0xff]  ;;  %1676 = vmatpush3.bf16.msra.mxu0 %v1675_v30 }
  0x3d   : > { %520 = vperm.xlu0 %1791, %v501_v4   ;;  %517 = vperm.xlu1 %1790, %v500_v5   ;;  %v2131_v8 = vsel %vm292_vm2, 1, %v1988_v7  ;;  %vm293_vm5 = vmand %vm261_vm3, %vm277_vm4  ;;  %v507_v16 = vadd.s32 128, %v2139_v11  ;;  %v509_v26 = vadd.s32 128, %v2163_v20  ;;  %v243_v34 = vld [vmem:[%s2112_s30 + $0x10] sm:$0xff]  ;;  %v511_v35 = vadd.s32 128, %v2180_v29  ;;  %v2197_v38 = vld [vmem:[%s2112_s30 + $0x68] sm:$0xff] }
  0x3e   : > { %v389_v12 = vsel %vm293_vm5, 1, %v1988_v7  ;;  %vm262_vm6 = vcmp.ge.s32.totalorder %v243_v34, 0  ;;  %vm278_vm7 = vcmp.lt.s32.totalorder %v243_v34, 128  ;;  %1678 = vmatprep.subr.bf16.mxu0 %v1677_v31  ;;  %v513_v43 = vadd.s32 128, %v2197_v38  ;;  %v813_v46 = vld [vmem:[%s2847_s1 + $0xc8] sm:$0xff]  ;;  %v796_v49 = vld [vmem:[%s2847_s1 + $0x40] sm:$0xff] }
  0x3f   : > { %v502_v44 = vadd.s32 128, %v243_v34  ;;  %vm294_vm8 = vmand %vm262_vm6, %vm278_vm7  ;;  %v1685_v48 = vpack.c.bf16 %v813_v46, %v812_v45  ;;  %v797_v50 = vld [vmem:[%s2847_s1 + $0x48] sm:$0xff]  ;;  %vm263_vm9 = vcmp.ge.s32.totalorder %v2121_v3, 0  ;;  %vm279_vm10 = vcmp.lt.s32.totalorder %v2121_v3, 128  ;;  %v814_v51 = vld [vmem:[%s2847_s1 + $0xd0] sm:$0xff]  ;;  %p2913_p9 = scmp.ne.s32.totalorder %s2855_s28, 0 }
  0x40   : > { %1680 = vmatpush3.bf16.msra.mxu0 %v1679_v39  ;;  %v815_v52 = vld [vmem:[%s2847_s1 + $0xd8] sm:$0xff]  ;;  %v390_v53 = vsel %vm294_vm8, 1, %v1988_v7  ;;  %v1687_v54 = vpack.c.bf16 %v797_v50, %v796_v49  ;;  %vm295_vm11 = vmand %vm263_vm9, %vm279_vm10  ;;  %v798_v56 = vld [vmem:[%s2847_s1 + $0x50] sm:$0xff]  ;;  %vm265_vm15 = vcmp.ge.s32.totalorder %v2134_v9, 0  ;;  %vm281_vm0 = vcmp.lt.s32.totalorder %v2134_v9, 128  ;;  %s1990_s11 = smov [#allocation5]  }
  0x41   : > { %526 = vperm.xlu0 %1791, %v503_v6   ;;  %597 = vperm.xlu1 %1790, %v2131_v8   ;;  %v1689_v55 = vpack.c.bf16 %v815_v52, %v814_v51  ;;  %v799_v57 = vld [vmem:[%s2847_s1 + $0x58] sm:$0xff]  ;;  %v816_v58 = vld [vmem:[%s2847_s1 + $0xe0] sm:$0xff]  ;;  %v817_v59 = vld [vmem:[%s2847_s1 + $0xe8] sm:$0xff]  ;;  %v391_v60 = vsel %vm295_vm11, 1, %v1988_v7  ;;  %vm267_vm11 = vcmp.ge.s32.totalorder %v2139_v11, 0  ;;  %v257_v45 = vlaneseq  ;;  %p1918_p10 = pnand %p1917_p6, %p2913_p9  ;;  %s1920_s12 = sshll.u32 %s1990_s11, 4  ;;  %s1921_s12 = int_to_ptr.vmem [resolvable:$false] %s1920_s12 }
  0x42   : > { %1682 = vmatprep.subr.bf16.mxu0 %v1681_v40  ;;  %v1691_v61 = vpack.c.bf16 %v799_v57, %v798_v56  ;;  %v1693_v62 = vpack.c.bf16 %v817_v59, %v816_v58  ;;  %v800_v63 = vld [vmem:[%s2847_s1 + $0x60] sm:$0xff]  ;;  %v801_v4 = vld [vmem:[%s2847_s1 + $0x68] sm:$0xff]  ;;  %v819_v5 = vld [vmem:[%s2847_s1 + $0xf8] sm:$0xff]  ;;  %v2868_v57 = vmov 0  ;;  %s1922_s13 = scalar_lea.vmem %s1921_s12, 4096  ;;  %p1923_p2 = scmp.lt.s32.totalorder %s2798_s6, %s1921_s12 }
  0x43   : > { %v1695_v6 = vpack.c.bf16 %v801_v4, %v800_v63  ;;  %v803_v13 = vld [vmem:[%s2847_s1 + $0x78] sm:$0xff]  ;;  %v245_v14 = vld [vmem:[%s2112_s30 + $0x20] sm:$0xff]  ;;  %vm297_vm3 = vmand %vm265_vm15, %vm281_vm0  ;;  %v2358_v49 = vand.u32 127, %v257_v45  ;;  %v1989_v4 = vmov 1.0   ;;  %p1919_p12 = pneg %p1918_p10  ;;  %p1924_p3 = scmp.lt.s32.totalorder %s1922_s13, %s1916_s10 }
  0x44   : > { %1684 = vmatpush3.bf16.msra.mxu0 %v1683_v47  ;;  %vm264_vm12 = vcmp.ge.s32.totalorder %v245_v14, 0  ;;  %vm280_vm13 = vcmp.lt.s32.totalorder %v245_v14, 128  ;;  %v504_v15 = vadd.s32 128, %v245_v14  ;;  %v393_v17 = vsel %vm297_vm3, 1, %v1988_v7  ;;  %v251_v19 = vld [vmem:[%s2112_s30 + $0x50] sm:$0xff]  ;;  %v2286_v22 = vld [vmem:[%s2112_s30 + $0x60] sm:$0xff] }
  0x45   : > { %532 = vperm.xlu0 %1791, %v505_v10   ;;  %1792 = vset.pattern.permute.xlu1 %v1988_v7  ;;  %vm296_vm14 = vmand %vm264_vm12, %vm280_vm13  ;;  %vm270_vm8 = vcmp.ge.s32.totalorder %v251_v19, 0  ;;  %vm286_vm9 = vcmp.lt.s32.totalorder %v251_v19, 128  ;;  %vm283_vm12 = vcmp.lt.s32.totalorder %v2139_v11, 128  ;;  %vm272_vm13 = vcmp.ge.s32.totalorder %v2286_v22, 0  ;;  %v2296_v24 = vld [vmem:[%s2112_s30 + $0x70] sm:$0xff]  ;;  %v2314_v27 = vld [vmem:[%s2112_s30 + $0x78] sm:$0xff]  ;;  %p1925_p4 = por %p1924_p3, %p1923_p2 }
  0x46   : > { %408 = vperm.xlu1 %1792, %v389_v12   ;;  %1686 = vmatprep.subr.bf16.mxu0 %v1685_v48  ;;  %vm302_vm10 = vmand %vm270_vm8, %vm286_vm9  ;;  %v515_v30 = vadd.s32 128, %v2314_v27  ;;  %v510_v32 = vadd.s32 128, %v251_v19  ;;  %vm287_vm8 = vcmp.lt.s32.totalorder %v2180_v29, 128  ;;  %v512_v40 = vadd.s32 128, %v2286_v22 }
  0x47   : > { %v398_v23 = vsel %vm302_vm10, 1, %v1988_v7  ;;  %vm299_vm15 = vmand %vm267_vm11, %vm283_vm12  ;;  %vm273_vm10 = vcmp.ge.s32.totalorder %v2197_v38, 0  ;;  %vm289_vm11 = vcmp.lt.s32.totalorder %v2197_v38, 128  ;;  %v514_v59 = vadd.s32 128, %v2296_v24  ;;  %p1926_p7 = pnand %p1925_p4, %p1919_p12 }
  0x48   : > { %1688 = vmatpush3.bf16.msra.mxu0 %v1687_v54  ;;  %v395_v25 = vsel %vm299_vm15, 1, %v1988_v7  ;;  %vm305_vm12 = vmand %vm273_vm10, %vm289_vm11 }
  0x49   : > { %538 = vperm.xlu0 %1791, %v507_v16   ;;  %1690 = vmatprep.subr.bf16.mxu0 %v1689_v55  ;;  %v392_v16 = vsel %vm296_vm14, 1, %v1988_v7  ;;  %vm288_vm14 = vcmp.lt.s32.totalorder %v2286_v22, 128  ;;  %v401_v46 = vsel %vm305_vm12, 1, %v1988_v7 }
  0x4a   : > { %1793 = vset.pattern.permute.xlu1 %v1987_v0  ;;  %vm304_vm0 = vmand %vm272_vm13, %vm288_vm14 }
  0x4b   : > { %600 = vperm.xlu1 %1793, %v389_v12   ;;  %v802_v12 = vld [vmem:[%s2847_s1 + $0x70] sm:$0xff] }
  0x4c   : > { %1692 = vmatpush3.bf16.msra.mxu0 %v1691_v61 }
  0x4d   : > { %544 = vperm.xlu0 %1791, %v509_v26   ;;  %1694 = vmatprep.subr.bf16.mxu0 %v1693_v62  ;;  %v2300_v26 = vsel %vm304_vm0, 1, %v1988_v7  ;;  %v999_v62 = vld [vmem:[#allocation2 + $0x58] sm:$0xff] }
  0x4f   : > { %1794 = vset.pattern.permute.xlu1 %v1988_v7 }
  0x50   : > { %315 = vperm.xlu1 %1794, %v243_v34   ;;  %1696 = vmatpush3.bf16.msra.mxu0 %v1695_v6 }
  0x51   : > { %550 = vperm.xlu0 %1791, %v511_v35  }
  0x54   : > { %1795 = vset.pattern.permute.xlu1 %v1987_v0 }
  0x55   : > { %556 = vperm.xlu0 %1791, %v513_v43   ;;  %523 = vperm.xlu1 %1795, %v502_v44  }
  0x59   : > { %1817 = vset.pattern.permute.xlu0 %v1988_v7  ;;  %603 = vperm.xlu1 %1795, %v390_v53  }
  0x5a   : > { %309 = vperm.xlu0 %1817, %v2118_v2   ;;  %v818_v2 = vld [vmem:[%s2847_s1 + $0xf0] sm:$0xff] }
  0x5b   : > { %v1697_v10 = vpack.c.bf16 %v819_v5, %v818_v2 }
  0x5d   : > { %1796 = vset.pattern.permute.xlu1 %v1988_v7  ;;  %1698 = vmatprep.subr.bf16.mxu0 %v1697_v10  ;;  %v1001_v10 = vld [vmem:[#allocation2 + $0x68] sm:$0xff] }
  0x5e   : > { %405 = vperm.xlu0 %1817, %v2131_v8   ;;  %414 = vperm.xlu1 %1796, %v391_v60   ;;  %v1699_v8 = vpack.c.bf16 %v803_v13, %v802_v12 }
  0x60   : > { %1700 = vmatpush3.bf16.msra.mxu0 %v1699_v8 }
  0x62   : > { %312 = vperm.xlu0 %1817, %v2115_v1   ;;  %1797 = vset.pattern.permute.xlu1 %v1987_v0  ;;  %v247_v1 = vld [vmem:[%s2112_s30 + $0x30] sm:$0xff] }
  0x63   : > { %606 = vperm.xlu1 %1797, %v391_v60   ;;  %vm266_vm1 = vcmp.ge.s32.totalorder %v247_v1, 0  ;;  %vm282_vm2 = vcmp.lt.s32.totalorder %v247_v1, 128  ;;  %v506_v21 = vadd.s32 128, %v247_v1 }
  0x64   : > { %vm298_vm4 = vmand %vm266_vm1, %vm282_vm2  ;;  %vm274_vm1 = vcmp.ge.s32.totalorder %v2296_v24, 0  ;;  %vm290_vm2 = vcmp.lt.s32.totalorder %v2296_v24, 128 }
  0x65   : > { %v394_v18 = vsel %vm298_vm4, 1, %v1988_v7  ;;  %vm306_vm3 = vmand %vm274_vm1, %vm290_vm2  ;;  %vm269_vm4 = vcmp.ge.s32.totalorder %v2163_v20, 0  ;;  %vm275_vm2 = vcmp.ge.s32.totalorder %v2314_v27, 0 }
  0x66   : > { %411 = vperm.xlu0 %1817, %v390_v53  }
  0x67   : > { %1798 = vset.pattern.permute.xlu1 %v1988_v7 }
  0x68   : > { %321 = vperm.xlu1 %1798, %v245_v14  }
  0x6a   : > { %318 = vperm.xlu0 %1817, %v2121_v3   ;;  %v249_v3 = vld [vmem:[%s2112_s30 + $0x40] sm:$0xff] }
  0x6b   : > { %vm268_vm5 = vcmp.ge.s32.totalorder %v249_v3, 0  ;;  %vm284_vm6 = vcmp.lt.s32.totalorder %v249_v3, 128  ;;  %v508_v28 = vadd.s32 128, %v249_v3 }
  0x6c   : > { %1799 = vset.pattern.permute.xlu1 %v1987_v0  ;;  %vm300_vm7 = vmand %vm268_vm5, %vm284_vm6  ;;  %vm285_vm5 = vcmp.lt.s32.totalorder %v2163_v20, 128 }
  0x6d   : > { %529 = vperm.xlu1 %1799, %v504_v15   ;;  %vm301_vm6 = vmand %vm269_vm4, %vm285_vm5  ;;  %v2891_v15 = vmov 0 }
  0x6e   : > { %417 = vperm.xlu0 %1817, %v392_v16   ;;  %v397_v31 = vsel %vm301_vm6, 1, %v1988_v7 }
  0x71   : > { %609 = vperm.xlu1 %1799, %v392_v16  }
  0x72   : > { %324 = vperm.xlu0 %1817, %v2134_v9   ;;  %v396_v9 = vsel %vm300_vm7, 1, %v1988_v7  ;;  %vm271_vm7 = vcmp.ge.s32.totalorder %v2180_v29, 0 }
  0x73   : > { %vm303_vm9 = vmand %vm271_vm7, %vm287_vm8 }
  0x75   : > { %1800 = vset.pattern.permute.xlu1 %v1988_v7 }
  0x76   : > { %420 = vperm.xlu1 %1800, %v393_v17   ;;  %423 = vperm.xlu0 %1817, %v394_v18  }
  0x7a   : > { %1801 = vset.pattern.permute.xlu1 %v1987_v0  ;;  %330 = vperm.xlu0 %1817, %v2139_v11   ;;  %v2309_v11 = vsel %vm306_vm3, 1, %v1988_v7  ;;  %vm291_vm3 = vcmp.lt.s32.totalorder %v2314_v27, 128 }
  0x7b   : > { %612 = vperm.xlu1 %1801, %v393_v17  }
  0x7e   : > { %429 = vperm.xlu0 %1817, %v396_v9  }
  0x7f   : > { %1802 = vset.pattern.permute.xlu1 %v1988_v7 }
  0x80   : > { %327 = vperm.xlu1 %1802, %v247_v1  }
  0x82   : > { %336 = vperm.xlu0 %1817, %v2163_v20   ;;  %v399_v20 = vsel %vm303_vm9, 1, %v1988_v7 }
  0x84   : > { %1803 = vset.pattern.permute.xlu1 %v1987_v0 }
  0x85   : > { %535 = vperm.xlu1 %1803, %v506_v21  }
  0x86   : > { %435 = vperm.xlu0 %1817, %v398_v23  }
  0x89   : > { %615 = vperm.xlu1 %1803, %v394_v18  }
  0x8a   : > { %342 = vperm.xlu0 %1817, %v2180_v29  }
  0x8d   : > { %1804 = vset.pattern.permute.xlu1 %v1988_v7 }
  0x8e   : > { %426 = vperm.xlu1 %1804, %v395_v25   ;;  %441 = vperm.xlu0 %1817, %v2300_v26  }
  0x92   : > { %1805 = vset.pattern.permute.xlu1 %v1987_v0  ;;  %348 = vperm.xlu0 %1817, %v2197_v38   ;;  %v2362_v38 = vadd.s32 128, %v2358_v49 }
  0x93   : > { %618 = vperm.xlu1 %1805, %v395_v25  }
  0x96   : > { %447 = vperm.xlu0 %1817, %v2309_v11  }
  0x97   : > { %1806 = vset.pattern.permute.xlu1 %v1988_v7 }
  0x98   : > { %333 = vperm.xlu1 %1806, %v249_v3  }
  0x9a   : > { %354 = vperm.xlu0 %1817, %v2314_v27   ;;  %v991_v27 = vld [vmem:[#allocation2 + $0x18] sm:$0xff] }
  0x9c   : > { %1807 = vset.pattern.permute.xlu1 %v1987_v0 }
  0x9d   : > { %541 = vperm.xlu1 %1807, %v508_v28  }
  0x9e   : > { %1822 = vset.pattern.permute.xlu0 %v1987_v0 }
  0x9f   : > { %562 = vperm.xlu0 %1822, %v515_v30  }
  0xa1   : > { %621 = vperm.xlu1 %1807, %v396_v9  }
  0xa5   : > { %1808 = vset.pattern.permute.xlu1 %v1988_v7 }
  0xa6   : > { %432 = vperm.xlu1 %1808, %v397_v31  }
  0xaa   : > { %1809 = vset.pattern.permute.xlu1 %v1987_v0 }
  0xab   : > { %624 = vperm.xlu1 %1809, %v397_v31   ;;  %v992_v31 = vld [vmem:[#allocation2 + $0x20] sm:$0xff] }
  0xaf   : > { %1810 = vset.pattern.permute.xlu1 %v1988_v7 }
  0xb0   : > { %339 = vperm.xlu1 %1810, %v251_v19  }
  0xb4   : > { %1811 = vset.pattern.permute.xlu1 %v1987_v0 }
  0xb5   : > { %547 = vperm.xlu1 %1811, %v510_v32   ;;  %v993_v32 = vld [vmem:[#allocation2 + $0x28] sm:$0xff] }
  0xb9   : > { %627 = vperm.xlu1 %1811, %v398_v23   ;;  %v989_v23 = vld [vmem:[#allocation2 + $0x8] sm:$0xff] }
  0xbc   : > { %v518_v33 = vpop.permute.xlu1 %517  ;;  %v2330_v34 = vpop.permute.xlu0 %520 }
  0xbd   : > { %1812 = vset.pattern.permute.xlu1 %v1988_v7  ;;  %vm564_vm14 = vcmp.eq.s32.totalorder %v2358_v49, %v518_v33  ;;  %vm565_vm1 = vcmp.eq.s32.totalorder %v2362_v38, %v518_v33  ;;  %vm567_vm7 = vcmp.eq.s32.totalorder %v2362_v38, %v2330_v34  ;;  %vm566_vm10 = vcmp.eq.s32.totalorder %v2358_v49, %v2330_v34  ;;  %v994_v34 = vld [vmem:[#allocation2 + $0x30] sm:$0xff] }
  0xbe   : > { %438 = vperm.xlu1 %1812, %v399_v20  }
  0xc0   : > { %v598_v35 = vpop.permute.xlu1 %597  ;;  %v2333_v36 = vpop.permute.xlu0 %526 }
  0xc1   : > { %vm644_vm13 = vcmp.eq.s32.totalorder %v598_v35, 1  ;;  %v995_v35 = vld [vmem:[#allocation2 + $0x38] sm:$0xff] }
  0xc2   : > { %1813 = vset.pattern.permute.xlu1 %v1987_v0  ;;  %vm2367_vm0 = vmand %vm564_vm14, %vm644_vm13 }
  0xc3   : > { %630 = vperm.xlu1 %1813, %v399_v20   ;;  %vm2377_vm6 = vmand %vm565_vm1, %vm644_vm13  ;;  %v1709_v20 = vpack.c.bf16 %v993_v32, %v992_v31 }
  0xc4   : > { %v2336_v37 = vpop.permute.xlu0 %532  ;;  %vm2395_vm13 = vmand %vm275_vm2, %vm291_vm3 }
  0xc5   : > { %v2338_v39 = vpop.permute.xlu1 %408  ;;  %v2869_v57 = vsel %vm2395_vm13, 4294967295, %v2868_v57 }
  0xc7   : > { %1814 = vset.pattern.permute.xlu1 %v1988_v7 }
  0xc8   : > { %345 = vperm.xlu1 %1814, %v2286_v22   ;;  %v2342_v29 = vpop.permute.xlu0 %538 }
  0xca   : > { %v601_v41 = vpop.permute.xlu1 %600 }
  0xcb   : > { %vm645_vm8 = vcmp.eq.s32.totalorder %v601_v41, 1 }
  0xcc   : > { %1815 = vset.pattern.permute.xlu1 %v1987_v0  ;;  %v2346_v42 = vpop.permute.xlu0 %544  ;;  %vm2410_vm2 = vmand %vm566_vm10, %vm645_vm8  ;;  %vm571_vm10 = vcmp.eq.s32.totalorder %v2362_v38, %v2333_v36 }
  0xcd   : > { %553 = vperm.xlu1 %1815, %v512_v40   ;;  %v997_v40 = vld [vmem:[#allocation2 + $0x48] sm:$0xff] }
  0xcf   : > { %v2350_v43 = vpop.permute.xlu1 %315 }
  0xd0   : > { %v2352_v44 = vpop.permute.xlu0 %550 }
  0xd1   : > { %633 = vperm.xlu1 %1815, %v2300_v26  }
  0xd4   : > { %v524_v47 = vpop.permute.xlu1 %523  ;;  %v2356_v48 = vpop.permute.xlu0 %556 }
  0xd5   : > { %1816 = vset.pattern.permute.xlu1 %v1988_v7  ;;  %vm568_vm1 = vcmp.eq.s32.totalorder %v2358_v49, %v524_v47  ;;  %vm569_vm3 = vcmp.eq.s32.totalorder %v2362_v38, %v524_v47 }
  0xd6   : > { %444 = vperm.xlu1 %1816, %v401_v46  }
  0xd8   : > { %v604_v50 = vpop.permute.xlu1 %603 }
  0xd9   : > { %v310_v51 = vpop.permute.xlu0 %309 }
  0xda   : > { %1818 = vset.pattern.permute.xlu1 %v1987_v0  ;;  %vm356_vm15 = vcmp.eq.s32.totalorder %v2358_v49, %v310_v51  ;;  %vm357_vm4 = vcmp.eq.s32.totalorder %v2362_v38, %v310_v51 }
  0xdb   : > { %636 = vperm.xlu1 %1818, %v401_v46  }
  0xdd   : > { %v406_v53 = vpop.permute.xlu0 %405  ;;  %v2371_v54 = vpop.permute.xlu1 %414 }
  0xde   : > { %vm452_vm5 = vcmp.eq.s32.totalorder %v406_v53, 1 }
  0xdf   : > { %vm2383_vm9 = vmand %vm356_vm15, %vm452_vm5  ;;  %1819 = vset.pattern.permute.xlu1 %v1988_v7 }
  0xe0   : > { %351 = vperm.xlu1 %1819, %v2296_v24   ;;  %vm469_vm14 = vmand %vm357_vm4, %vm452_vm5  ;;  %vm2874_vm4 = vcmp.eq.s32.totalorder %v604_v50, 1  ;;  %v990_v24 = vld [vmem:[#allocation2 + $0x10] sm:$0xff] }
  0xe1   : > { %v313_v58 = vpop.permute.xlu0 %312  ;;  %vm2401_vm15 = vmand %vm567_vm7, %vm645_vm8  ;;  %v1705_v30 = vpack.c.bf16 %v991_v27, %v990_v24 }
  0xe2   : > { %vm358_vm11 = vcmp.eq.s32.totalorder %v2358_v49, %v313_v58  ;;  %vm693_vm12 = vmor %vm469_vm14, %vm2377_vm6  ;;  %v607_v61 = vpop.permute.xlu1 %606  ;;  %vm359_vm7 = vcmp.eq.s32.totalorder %v2362_v38, %v313_v58  ;;  %vm453_vm6 = vcmp.eq.s32.totalorder %v2338_v39, 1  ;;  %v996_v39 = vld [vmem:[#allocation2 + $0x40] sm:$0xff] }
  0xe3   : > { %vm2416_vm5 = vmand %vm568_vm1, %vm2874_vm4  ;;  %1462 = vmatprep.mubr.msk.f32.mxu0 %vm693_vm12, %v1989_v4  ;;  %vm647_vm1 = vcmp.eq.s32.totalorder %v607_v61, 1  ;;  %v998_v61 = vld [vmem:[#allocation2 + $0x50] sm:$0xff] }
  0xe4   : > { %vm2877_vm14 = vmmov %vm2874_vm4  ;;  %1820 = vset.pattern.permute.xlu1 %v1987_v0  ;;  %v1721_v2 = vpack.c.bf16 %v999_v62, %v998_v61 }
  0xe5   : > { %vm2424_vm13 = vmand %vm569_vm3, %vm2877_vm14  ;;  %v412_v6 = vpop.permute.xlu0 %411  ;;  %559 = vperm.xlu1 %1820, %v514_v59   ;;  %vm570_vm3 = vcmp.eq.s32.totalorder %v2358_v49, %v2333_v36 }
  0xe6   : > { %vm2880_vm8 = vmor %vm2383_vm9, %vm2367_vm0  ;;  %vm360_vm0 = vcmp.eq.s32.totalorder %v2358_v49, %v2350_v43  ;;  %vm454_vm9 = vcmp.eq.s32.totalorder %v412_v6, 1  ;;  %v1000_v6 = vld [vmem:[#allocation2 + $0x60] sm:$0xff] }
  0xe7   : > { %1463 = vmatmul.mubr.msk.f32.vlgmr.msra.gmra.mrb[0].mxu0 %vm2880_vm8, %v1989_v4  ;;  %vm2437_vm12 = vmand %vm358_vm11, %vm453_vm6  ;;  %vm361_vm11 = vcmp.eq.s32.totalorder %v2362_v38, %v2350_v43  ;;  %v322_v13 = vpop.permute.xlu1 %321  ;;  %v1717_v43 = vpack.c.bf16 %v997_v40, %v996_v39  ;;  %v1725_v12 = vpack.c.bf16 %v1001_v10, %v1000_v6 }
  0xe8   : > { %vm2443_vm4 = vmand %vm359_vm7, %vm453_vm6 }
  0xe9   : > { %vm2451_vm14 = vmand %vm360_vm0, %vm454_vm9  ;;  %v319_v1 = vpop.permute.xlu0 %318  ;;  %639 = vperm.xlu1 %1820, %v2309_v11   ;;  %vm455_vm0 = vcmp.eq.s32.totalorder %v2371_v54, 1 }
  0xea   : > { %vm2455_vm8 = vmand %vm571_vm10, %vm647_vm1 }
  0xeb   : > { %vm2459_vm7 = vmand %vm361_vm11, %vm454_vm9  ;;  %vm362_vm9 = vcmp.eq.s32.totalorder %v2358_v49, %v319_v1  ;;  %vm2893_vm11 = vnez %v2869_v57 }
  0xec   : > { %vm2463_vm6 = vmand %vm570_vm3, %vm647_vm1  ;;  %vm363_vm3 = vcmp.eq.s32.totalorder %v2362_v38, %v319_v1  ;;  %v403_v16 = vsel %vm2893_vm11, 1, %v1988_v7  ;;  %v530_v3 = vpop.permute.xlu1 %529  ;;  %v1003_v1 = vld [vmem:[#allocation2 + $0x78] sm:$0xff] }
  0xed   : > { %v2892_v15 = vsel %vm2463_vm6, 4294967295, %v2891_v15  ;;  %vm695_vm1 = vmor %vm2443_vm4, %vm2401_vm15  ;;  %v418_v18 = vpop.permute.xlu0 %417  ;;  %1821 = vset.pattern.permute.xlu1 %v1988_v7  ;;  %vm364_vm15 = vcmp.eq.s32.totalorder %v2358_v49, %v322_v13 }
  0xee   : > { %1464 = vmatprep.mubr.msk.f32.mxu0 %vm695_vm1, %v1989_v4  ;;  %vm694_vm10 = vmor %vm2437_vm12, %vm2410_vm2  ;;  %vm456_vm2 = vcmp.eq.s32.totalorder %v418_v18, 1  ;;  %450 = vperm.xlu1 %1821, %v403_v16   ;;  %vm365_vm12 = vcmp.eq.s32.totalorder %v2362_v38, %v322_v13  ;;  %vm2902_vm11 = vnez %v2892_v15  ;;  %v1002_v15 = vld [vmem:[#allocation2 + $0x70] sm:$0xff] }
  0xef   : > { %1465 = vmatmul.mubr.msk.f32.gmra.mrb[2].mxu0 %vm694_vm10, %v1989_v4  ;;  %vm2492_vm6 = vmand %vm362_vm9, %vm455_vm0 }
  0xf0   : > { %vm475_vm4 = vmand %vm363_vm3, %vm455_vm0  ;;  %v610_v9 = vpop.permute.xlu1 %609  ;;  %vm572_vm3 = vcmp.eq.s32.totalorder %v2358_v49, %v530_v3 }
  0xf1   : > { %vm2896_vm1 = vmor %vm2459_vm7, %vm2424_vm13  ;;  %vm648_vm0 = vcmp.eq.s32.totalorder %v610_v9, 1  ;;  %v325_v21 = vpop.permute.xlu0 %324 }
  0xf2   : > { %1466 = vmatprep.mubr.msk.f32.mxu0 %vm2896_vm1, %v1989_v4  ;;  %vm2505_vm10 = vmand %vm364_vm15, %vm456_vm2  ;;  %1823 = vset.pattern.permute.xlu1 %v1987_v0  ;;  %vm573_vm1 = vcmp.eq.s32.totalorder %v2362_v38, %v530_v3  ;;  %v988_v0 = vld [vmem:[#allocation2] sm:$0xff] }
  0xf3   : > { %vm2509_vm9 = vmand %vm365_vm12, %vm456_vm2  ;;  %642 = vperm.xlu1 %1823, %v403_v16   ;;  %vm367_vm12 = vcmp.eq.s32.totalorder %v2362_v38, %v325_v21  ;;  %v1701_v11 = vpack.c.bf16 %v989_v23, %v988_v0  ;;  %v1729_v16 = vpack.c.bf16 %v1003_v1, %v1002_v15 }
  0xf4   : > { %vm2901_vm13 = vmor %vm2451_vm14, %vm2416_vm5 }
  0xf5   : > { %1467 = vmatmul.mubr.msk.f32.gmra.mrb[4].mxu0 %vm2901_vm13, %v1989_v4  ;;  %vm699_vm7 = vmor %vm475_vm4, %vm2455_vm8  ;;  %v421_v22 = vpop.permute.xlu1 %420  ;;  %vm574_vm13 = vcmp.eq.s32.totalorder %v2358_v49, %v2336_v37  ;;  %1702 = vmatprep.subr.bf16.mxu1 %v1701_v11  ;;  %v424_v36 = vpop.permute.xlu0 %423 }
  0xf6   : > { %1468 = vmatprep.mubr.msk.f32.mxu0 %vm699_vm7, %v1989_v4  ;;  %vm698_vm15 = vmor %vm2492_vm6, %vm2902_vm11  ;;  %vm366_vm6 = vcmp.eq.s32.totalorder %v2358_v49, %v325_v21  ;;  %vm457_vm4 = vcmp.eq.s32.totalorder %v421_v22, 1  ;;  %1704 = vmatpush3.bf16.msra.mxu1 %v1701_v11 }
  0xf7   : > { %vm668_vm2 = vmand %vm572_vm3, %vm648_vm0  ;;  %1706 = vmatprep.subr.bf16.mxu1 %v1705_v30 }
  0xf8   : > { %vm669_vm5 = vmand %vm573_vm1, %vm648_vm0 }
  0xf9   : > { %1469 = vmatmul.mubr.msk.f32.gmra.mrb[6].mxu0 %vm698_vm15, %v1989_v4  ;;  %vm700_vm14 = vmor %vm2505_vm10, %vm668_vm2  ;;  %vm575_vm10 = vcmp.eq.s32.totalorder %v2362_v38, %v2336_v37  ;;  %v1713_v37 = vpack.c.bf16 %v995_v35, %v994_v34  ;;  %vm458_vm2 = vcmp.eq.s32.totalorder %v424_v36, 1  ;;  %v331_v47 = vpop.permute.xlu0 %330 }
  0xfa   : > { %vm701_vm8 = vmor %vm2509_vm9, %vm669_vm5  ;;  %v613_v26 = vpop.permute.xlu1 %612  ;;  %1708 = vmatpush3.bf16.msra.mxu1 %v1705_v30 }
  0xfb   : > { %1470 = vmatprep.mubr.msk.f32.mxu0 %vm701_vm8, %v1989_v4  ;;  %vm2542_vm7 = vmand %vm366_vm6, %vm457_vm4  ;;  %vm649_vm0 = vcmp.eq.s32.totalorder %v613_v26, 1  ;;  %1710 = vmatprep.subr.bf16.mxu1 %v1709_v20 }
  0xfc   : > { %vm2546_vm9 = vmand %vm367_vm12, %vm457_vm4 }
  0xfd   : > { %1471 = vmatmul.mubr.msk.f32.gmra.mrb[8].mxu0 %vm700_vm14, %v1989_v4  ;;  %vm670_vm3 = vmand %vm574_vm13, %vm649_vm0  ;;  %v430_v53 = vpop.permute.xlu0 %429 }
  0xfe   : > { %vm671_vm11 = vmand %vm575_vm10, %vm649_vm0  ;;  %1712 = vmatpush3.bf16.msra.mxu1 %v1709_v20 }
  0xff   : > { %vm702_vm15 = vmor %vm2542_vm7, %vm670_vm3  ;;  %v328_v33 = vpop.permute.xlu1 %327  ;;  %1714 = vmatprep.subr.bf16.mxu1 %v1713_v37  ;;  %vm370_vm3 = vcmp.eq.s32.totalorder %v2358_v49, %v331_v47 }
 0x100   : > { %vm703_vm1 = vmor %vm2546_vm9, %vm671_vm11  ;;  %vm368_vm5 = vcmp.eq.s32.totalorder %v2358_v49, %v328_v33  ;;  %vm369_vm14 = vcmp.eq.s32.totalorder %v2362_v38, %v328_v33 }
 0x101   : > { %1472 = vmatprep.mubr.msk.f32.mxu0 %vm703_vm1, %v1989_v4  ;;  %vm2561_vm8 = vmand %vm368_vm5, %vm458_vm2  ;;  %v337_v56 = vpop.permute.xlu0 %336 }
 0x102   : > { %1473 = vmatmul.mubr.msk.f32.gmra.mrb[10].mxu0 %vm702_vm15, %v1989_v4  ;;  %vm481_vm6 = vmand %vm369_vm14, %vm458_vm2  ;;  %1716 = vmatpush3.bf16.msra.mxu1 %v1713_v37  ;;  %vm371_vm15 = vcmp.eq.s32.totalorder %v2362_v38, %v331_v47  ;;  %vm578_vm2 = vcmp.eq.s32.totalorder %v2358_v49, %v2342_v29 }
 0x103   : > { %1718 = vmatprep.subr.bf16.mxu1 %v1717_v43 }
 0x104   : > { %v536_v41 = vpop.permute.xlu1 %535 }
 0x105   : > { %vm576_vm4 = vcmp.eq.s32.totalorder %v2358_v49, %v536_v41  ;;  %vm577_vm13 = vcmp.eq.s32.totalorder %v2362_v38, %v536_v41  ;;  %v436_v60 = vpop.permute.xlu0 %435 }
 0x106   : > { %1720 = vmatpush3.bf16.msra.mxu1 %v1717_v43 }
 0x107   : > { %1722 = vmatprep.subr.bf16.mxu1 %v1721_v2 }
 0x108   : > { %v616_v46 = vpop.permute.xlu1 %615 }
 0x109   : > { %vm650_vm12 = vcmp.eq.s32.totalorder %v616_v46, 1  ;;  %v343_v13 = vpop.permute.xlu0 %342 }
 0x10a   : > { %vm672_vm10 = vmand %vm576_vm4, %vm650_vm12  ;;  %1724 = vmatpush3.bf16.msra.mxu1 %v1721_v2 }
 0x10b   : > { %vm673_vm7 = vmand %vm577_vm13, %vm650_vm12  ;;  %1726 = vmatprep.subr.bf16.mxu1 %v1725_v12 }
 0x10c   : > { %vm704_vm9 = vmor %vm2561_vm8, %vm672_vm10  ;;  %vm579_vm8 = vcmp.eq.s32.totalorder %v2362_v38, %v2342_v29  ;;  %vm460_vm10 = vcmp.eq.s32.totalorder %v430_v53, 1 }
 0x10d   : > { %vm705_vm0 = vmor %vm481_vm6, %vm673_vm7  ;;  %v427_v50 = vpop.permute.xlu1 %426  ;;  %v442_v18 = vpop.permute.xlu0 %441 }
 0x10e   : > { %1474 = vmatprep.mubr.msk.f32.mxu0 %vm705_vm0, %v1989_v4  ;;  %vm459_vm11 = vcmp.eq.s32.totalorder %v427_v50, 1  ;;  %1728 = vmatpush3.bf16.msra.mxu1 %v1725_v12 }
 0x10f   : > { %1475 = vmatmul.mubr.msk.f32.gmra.mrb[12].mxu0 %vm704_vm9, %v1989_v4  ;;  %vm482_vm1 = vmand %vm370_vm3, %vm459_vm11  ;;  %1730 = vmatprep.subr.bf16.mxu1 %v1729_v16 }
 0x110   : > { %vm483_vm5 = vmand %vm371_vm15, %vm459_vm11 }
 0x111   : > { %v349_v7 = vpop.permute.xlu0 %348 }
 0x112   : > { %v619_v51 = vpop.permute.xlu1 %618  ;;  %1732 = vmatpush3.bf16.msra.mxu1 %v1729_v16 }
 0x113   : > { %vm651_vm14 = vcmp.eq.s32.totalorder %v619_v51, 1 }
 0x114   : > { %vm674_vm6 = vmand %vm578_vm2, %vm651_vm14 }
 0x115   : > { %vm675_vm4 = vmand %vm579_vm8, %vm651_vm14  ;;  %v448_v22 = vpop.permute.xlu0 %447 }
 0x116   : > { %vm706_vm12 = vmor %vm482_vm1, %vm674_vm6  ;;  %vm374_vm6 = vcmp.eq.s32.totalorder %v2358_v49, %v337_v56 }
 0x117   : > { %vm707_vm13 = vmor %vm483_vm5, %vm675_vm4  ;;  %v334_v52 = vpop.permute.xlu1 %333 }
 0x118   : > { %1476 = vmatprep.mubr.msk.f32.mxu0 %vm707_vm13, %v1989_v4  ;;  %vm372_vm7 = vcmp.eq.s32.totalorder %v2358_v49, %v334_v52  ;;  %vm373_vm9 = vcmp.eq.s32.totalorder %v2362_v38, %v334_v52 }
 0x119   : > { %1477 = vmatmul.mubr.msk.f32.gmra.mrb[14].mxu0 %vm706_vm12, %v1989_v4  ;;  %vm484_vm0 = vmand %vm372_vm7, %vm460_vm10  ;;  %vm375_vm12 = vcmp.eq.s32.totalorder %v2362_v38, %v337_v56 }
 0x11a   : > { %vm485_vm3 = vmand %vm373_vm9, %vm460_vm10  ;;  %vm582_vm10 = vcmp.eq.s32.totalorder %v2358_v49, %v2346_v42 }
 0x11c   : > { %v542_v54 = vpop.permute.xlu1 %541 }
 0x11d   : > { %vm580_vm11 = vcmp.eq.s32.totalorder %v2358_v49, %v542_v54  ;;  %vm581_vm1 = vcmp.eq.s32.totalorder %v2362_v38, %v542_v54 }
 0x120   : > { %v622_v55 = vpop.permute.xlu1 %621 }
 0x121   : > { %vm652_vm15 = vcmp.eq.s32.totalorder %v622_v55, 1 }
 0x122   : > { %vm676_vm2 = vmand %vm580_vm11, %vm652_vm15 }
 0x123   : > { %vm677_vm5 = vmand %vm581_vm1, %vm652_vm15 }
 0x124   : > { %vm708_vm14 = vmor %vm484_vm0, %vm676_vm2  ;;  %vm583_vm0 = vcmp.eq.s32.totalorder %v2362_v38, %v2346_v42 }
 0x125   : > { %vm709_vm8 = vmor %vm485_vm3, %vm677_vm5  ;;  %v433_v29 = vpop.permute.xlu1 %432 }
 0x126   : > { %1478 = vmatprep.mubr.msk.f32.mxu0 %vm709_vm8, %v1989_v4  ;;  %vm461_vm4 = vcmp.eq.s32.totalorder %v433_v29, 1 }
 0x127   : > { %1479 = vmatmul.mubr.msk.f32.gmra.mrb[16].mxu0 %vm708_vm14, %v1989_v4  ;;  %vm486_vm13 = vmand %vm374_vm6, %vm461_vm4  ;;  %vm462_vm14 = vcmp.eq.s32.totalorder %v436_v60, 1 }
 0x128   : > { %vm487_vm7 = vmand %vm375_vm12, %vm461_vm4 }
 0x12a   : > { %v625_v57 = vpop.permute.xlu1 %624 }
 0x12b   : > { %vm653_vm9 = vcmp.eq.s32.totalorder %v625_v57, 1 }
 0x12c   : > { %vm678_vm3 = vmand %vm582_vm10, %vm653_vm9 }
 0x12d   : > { %vm679_vm11 = vmand %vm583_vm0, %vm653_vm9 }
 0x12e   : > { %vm710_vm15 = vmor %vm486_vm13, %vm678_vm3 }
 0x12f   : > { %vm711_vm1 = vmor %vm487_vm7, %vm679_vm11  ;;  %v340_v58 = vpop.permute.xlu1 %339  ;;  %vm378_vm11 = vcmp.eq.s32.totalorder %v2358_v49, %v343_v13 }
 0x130   : > { %1480 = vmatprep.mubr.msk.f32.mxu0 %vm711_vm1, %v1989_v4  ;;  %vm376_vm2 = vcmp.eq.s32.totalorder %v2358_v49, %v340_v58  ;;  %vm377_vm5 = vcmp.eq.s32.totalorder %v2362_v38, %v340_v58 }
 0x131   : > { %1481 = vmatmul.mubr.msk.f32.gmra.mrb[18].mxu0 %vm710_vm15, %v1989_v4  ;;  %vm2595_vm8 = vmand %vm376_vm2, %vm462_vm14  ;;  %vm379_vm15 = vcmp.eq.s32.totalorder %v2362_v38, %v343_v13  ;;  %vm586_vm2 = vcmp.eq.s32.totalorder %v2358_v49, %v2352_v44 }
 0x132   : > { %vm489_vm6 = vmand %vm377_vm5, %vm462_vm14 }
 0x134   : > { %v548_v59 = vpop.permute.xlu1 %547 }
 0x135   : > { %vm584_vm4 = vcmp.eq.s32.totalorder %v2358_v49, %v548_v59  ;;  %vm585_vm13 = vcmp.eq.s32.totalorder %v2362_v38, %v548_v59 }
 0x138   : > { %v628_v63 = vpop.permute.xlu1 %627 }
 0x139   : > { %vm654_vm12 = vcmp.eq.s32.totalorder %v628_v63, 1 }
 0x13a   : > { %vm680_vm10 = vmand %vm584_vm4, %vm654_vm12 }
 0x13b   : > { %vm681_vm7 = vmand %vm585_vm13, %vm654_vm12 }
 0x13c   : > { %vm712_vm9 = vmor %vm2595_vm8, %vm680_vm10  ;;  %vm587_vm8 = vcmp.eq.s32.totalorder %v2362_v38, %v2352_v44 }
 0x13d   : > { %vm713_vm0 = vmor %vm489_vm6, %vm681_vm7  ;;  %v439_v5 = vpop.permute.xlu1 %438 }
 0x13e   : > { %1482 = vmatprep.mubr.msk.f32.mxu0 %vm713_vm0, %v1989_v4  ;;  %vm463_vm3 = vcmp.eq.s32.totalorder %v439_v5, 1 }
 0x13f   : > { %1483 = vmatmul.mubr.msk.f32.gmra.mrb[20].mxu0 %vm712_vm9, %v1989_v4  ;;  %vm2607_vm1 = vmand %vm378_vm11, %vm463_vm3  ;;  %vm464_vm9 = vcmp.eq.s32.totalorder %v442_v18, 1 }
 0x140   : > { %vm491_vm5 = vmand %vm379_vm15, %vm463_vm3 }
 0x142   : > { %v631_v14 = vpop.permute.xlu1 %630 }
 0x143   : > { %vm655_vm14 = vcmp.eq.s32.totalorder %v631_v14, 1 }
 0x144   : > { %vm682_vm6 = vmand %vm586_vm2, %vm655_vm14 }
 0x145   : > { %vm683_vm4 = vmand %vm587_vm8, %vm655_vm14 }
 0x146   : > { %vm714_vm12 = vmor %vm2607_vm1, %vm682_vm6 }
 0x147   : > { %vm715_vm13 = vmor %vm491_vm5, %vm683_vm4  ;;  %v346_v3 = vpop.permute.xlu1 %345  ;;  %vm382_vm4 = vcmp.eq.s32.totalorder %v2358_v49, %v349_v7 }
 0x148   : > { %1484 = vmatprep.mubr.msk.f32.mxu0 %vm715_vm13, %v1989_v4  ;;  %vm380_vm10 = vcmp.eq.s32.totalorder %v2358_v49, %v346_v3  ;;  %vm381_vm7 = vcmp.eq.s32.totalorder %v2362_v38, %v346_v3 }
 0x149   : > { %1485 = vmatmul.mubr.msk.f32.gmra.mrb[22].mxu0 %vm714_vm12, %v1989_v4  ;;  %vm492_vm0 = vmand %vm380_vm10, %vm464_vm9  ;;  %vm383_vm12 = vcmp.eq.s32.totalorder %v2362_v38, %v349_v7  ;;  %vm590_vm10 = vcmp.eq.s32.totalorder %v2358_v49, %v2356_v48 }
 0x14a   : > { %vm493_vm3 = vmand %vm381_vm7, %vm464_vm9 }
 0x14c   : > { %v554_v17 = vpop.permute.xlu1 %553 }
 0x14d   : > { %vm588_vm11 = vcmp.eq.s32.totalorder %v2358_v49, %v554_v17  ;;  %vm589_vm1 = vcmp.eq.s32.totalorder %v2362_v38, %v554_v17 }
 0x150   : > { %v634_v44 = vpop.permute.xlu1 %633 }
 0x151   : > { %vm656_vm15 = vcmp.eq.s32.totalorder %v634_v44, 1 }
 0x152   : > { %vm684_vm2 = vmand %vm588_vm11, %vm656_vm15 }
 0x153   : > { %vm685_vm5 = vmand %vm589_vm1, %vm656_vm15 }
 0x154   : > { %vm716_vm14 = vmor %vm492_vm0, %vm684_vm2  ;;  %vm591_vm0 = vcmp.eq.s32.totalorder %v2362_v38, %v2356_v48  ;;  %v355_v48 = vpop.permute.xlu0 %354 }
 0x155   : > { %vm717_vm8 = vmor %vm493_vm3, %vm685_vm5  ;;  %v445_v19 = vpop.permute.xlu1 %444 }
 0x156   : > { %1486 = vmatprep.mubr.msk.f32.mxu0 %vm717_vm8, %v1989_v4  ;;  %vm465_vm6 = vcmp.eq.s32.totalorder %v445_v19, 1 }
 0x157   : > { %1487 = vmatmul.mubr.msk.f32.gmra.mrb[24].mxu0 %vm716_vm14, %v1989_v4  ;;  %vm494_vm13 = vmand %vm382_vm4, %vm465_vm6  ;;  %vm466_vm14 = vcmp.eq.s32.totalorder %v448_v22, 1 }
 0x158   : > { %vm495_vm7 = vmand %vm383_vm12, %vm465_vm6  ;;  %v563_v25 = vpop.permute.xlu0 %562 }
 0x15a   : > { %v637_v9 = vpop.permute.xlu1 %636 }
 0x15b   : > { %vm657_vm9 = vcmp.eq.s32.totalorder %v637_v9, 1 }
 0x15c   : > { %vm686_vm3 = vmand %vm590_vm10, %vm657_vm9 }
 0x15d   : > { %vm687_vm11 = vmand %vm591_vm0, %vm657_vm9 }
 0x15e   : > { %vm718_vm15 = vmor %vm494_vm13, %vm686_vm3 }
 0x15f   : > { %vm719_vm1 = vmor %vm495_vm7, %vm687_vm11  ;;  %v352_v21 = vpop.permute.xlu1 %351  ;;  %vm386_vm11 = vcmp.eq.s32.totalorder %v2358_v49, %v355_v48 }
 0x160   : > { %1488 = vmatprep.mubr.msk.f32.mxu0 %vm719_vm1, %v1989_v4  ;;  %vm384_vm2 = vcmp.eq.s32.totalorder %v2358_v49, %v352_v21  ;;  %vm385_vm5 = vcmp.eq.s32.totalorder %v2362_v38, %v352_v21  ;;  %vm387_vm1 = vcmp.eq.s32.totalorder %v2362_v38, %v355_v48 }
 0x161   : > { %1489 = vmatmul.mubr.msk.f32.gmra.mrb[26].mxu0 %vm718_vm15, %v1989_v4  ;;  %vm496_vm8 = vmand %vm384_vm2, %vm466_vm14  ;;  %vm594_vm15 = vcmp.eq.s32.totalorder %v2358_v49, %v563_v25 }
 0x162   : > { %vm497_vm6 = vmand %vm385_vm5, %vm466_vm14  ;;  %vm595_vm5 = vcmp.eq.s32.totalorder %v2362_v38, %v563_v25 }
 0x164   : > { %v560_v0 = vpop.permute.xlu1 %559 }
 0x165   : > { %vm592_vm4 = vcmp.eq.s32.totalorder %v2358_v49, %v560_v0  ;;  %vm593_vm13 = vcmp.eq.s32.totalorder %v2362_v38, %v560_v0  ;;  %v2648_v49 = vld [vmem:[%s2848_s2] ss:$0 sm:$0xff] }
 0x168   : > { %v640_v23 = vpop.permute.xlu1 %639 }
 0x169   : > { %vm658_vm12 = vcmp.eq.s32.totalorder %v640_v23, 1 }
 0x16a   : > { %vm688_vm10 = vmand %vm592_vm4, %vm658_vm12 }
 0x16b   : > { %vm689_vm7 = vmand %vm593_vm13, %vm658_vm12 }
 0x16c   : > { %vm720_vm9 = vmor %vm496_vm8, %vm688_vm10 }
 0x16d   : > { %vm721_vm0 = vmor %vm497_vm6, %vm689_vm7  ;;  %v451_v24 = vpop.permute.xlu1 %450 }
 0x16e   : > { %1490 = vmatprep.mubr.msk.f32.mxu0 %vm721_vm0, %v1989_v4  ;;  %vm467_vm3 = vcmp.eq.s32.totalorder %v451_v24, 1 }
 0x16f   : > { %1491 = vmatmul.mubr.msk.f32.gmra.mrb[28].mxu0 %vm720_vm9, %v1989_v4  ;;  %vm498_vm2 = vmand %vm386_vm11, %vm467_vm3 }
 0x170   : > { %vm499_vm14 = vmand %vm387_vm1, %vm467_vm3 }
 0x172   : > { %v643_v26 = vpop.permute.xlu1 %642 }
 0x173   : > { %vm659_vm8 = vcmp.eq.s32.totalorder %v643_v26, 1 }
 0x174   : > { %vm690_vm6 = vmand %vm594_vm15, %vm659_vm8 }
 0x175   : > { %vm691_vm4 = vmand %vm595_vm5, %vm659_vm8 }
 0x176   : > { %vm722_vm12 = vmor %vm498_vm2, %vm690_vm6 }
 0x177   : > { %vm723_vm13 = vmor %vm499_vm14, %vm691_vm4 }
 0x178   : > { %1492 = vmatprep.mubr.msk.f32.mxu0 %vm723_vm13, %v1989_v4 }
 0x179   : > { %1493 = vmatmul.mubr.msk.f32.gmra.mrb[30].mxu0 %vm722_vm12, %v1989_v4 }
 0x1ba   : > { %v1533_v11 = vpop.f32.mrb[0].mxu0 }
 0x1bb   : > { %v1534_v27 = vpop.f32.mrb[1].mxu0 }
 0x1bc   : > { %v1535_v28 = vadd.f32 %v1534_v27, %v1533_v11 }
 0x1be   : > { %v894_v38 = vadd.f32 %v1535_v28, %v2648_v49 }
 0x1c0   : > { %v972_v30 = vmax.f32 %v894_v38, 0.0 }
 0x1c2   : > { %1645 = vmatprep.mubr.f32.mxu1 %v972_v30  ;;  %v1536_v31 = vpop.f32.mrb[2].mxu0 }
 0x1c3   : > { %v1537_v32 = vpop.f32.mrb[3].mxu0 }
 0x1c4   : > { %v1538_v20 = vadd.f32 %v1537_v32, %v1536_v31 }
 0x1c6   : > { %v899_v33 = vadd.f32 %v1538_v20, %v2648_v49 }
 0x1c8   : > { %v1539_v34 = vpop.f32.mrb[4].mxu0  ;;  %v973_v4 = vmax.f32 %v899_v33, 0.0 }
 0x1c9   : > { %v1540_v35 = vpop.f32.mrb[5].mxu0 }
 0x1ca   : > { %v1541_v36 = vadd.f32 %v1540_v35, %v1539_v34  ;;  %1646 = vmatmul.mubr.f32.vlgmr.msra.gmra.mrb[0].mxu1 %v973_v4 }
 0x1cc   : > { %v904_v37 = vadd.f32 %v1541_v36, %v2648_v49  ;;  %v1542_v39 = vpop.f32.mrb[6].mxu0 }
 0x1cd   : > { %v1543_v40 = vpop.f32.mrb[7].mxu0 }
 0x1ce   : > { %v974_v41 = vmax.f32 %v904_v37, 0.0  ;;  %v1544_v43 = vadd.f32 %v1543_v40, %v1542_v39 }
 0x1d0   : > { %v909_v45 = vadd.f32 %v1544_v43, %v2648_v49  ;;  %1648 = vmatprep.mubr.f32.mxu1 %v974_v41  ;;  %v1545_v46 = vpop.f32.mrb[8].mxu0  ;;  %v1494_v43 = vld [vmem:[%s2850_s4] ss:$0 sm:$0xff] }
 0x1d1   : > { %v1546_v47 = vpop.f32.mrb[9].mxu0 }
 0x1d2   : > { %v975_v50 = vmax.f32 %v909_v45, 0.0  ;;  %v1547_v51 = vadd.f32 %v1546_v47, %v1545_v46 }
 0x1d4   : > { %v914_v52 = vadd.f32 %v1547_v51, %v2648_v49  ;;  %1649 = vmatmul.mubr.f32.gmra.mrb[2].mxu1 %v975_v50 }
 0x1d5   : > { %v1548_v54 = vpop.f32.mrb[10].mxu0 }
 0x1d6   : > { %v976_v53 = vmax.f32 %v914_v52, 0.0  ;;  %v1549_v55 = vpop.f32.mrb[11].mxu0 }
 0x1d7   : > { %v1550_v29 = vadd.f32 %v1549_v55, %v1548_v54 }
 0x1d8   : > { %1651 = vmatprep.mubr.f32.mxu1 %v976_v53 }
 0x1d9   : > { %v919_v56 = vadd.f32 %v1550_v29, %v2648_v49 }
 0x1db   : > { %v977_v57 = vmax.f32 %v919_v56, 0.0 }
 0x1dd   : > { %1652 = vmatmul.mubr.f32.gmra.mrb[4].mxu1 %v977_v57 }
 0x1e2   : > { %v1551_v58 = vpop.f32.mrb[12].mxu0 }
 0x1e3   : > { %v1552_v59 = vpop.f32.mrb[13].mxu0 }
 0x1e4   : > { %v1553_v60 = vadd.f32 %v1552_v59, %v1551_v58 }
 0x1e6   : > { %v924_v61 = vadd.f32 %v1553_v60, %v2648_v49 }
 0x1e8   : > { %v978_v62 = vmax.f32 %v924_v61, 0.0 }
 0x1ea   : > { %1654 = vmatprep.mubr.f32.mxu1 %v978_v62 }
 0x1ec   : > { %v1554_v42 = vpop.f32.mrb[14].mxu0 }
 0x1ed   : > { %v1555_v63 = vpop.f32.mrb[15].mxu0 }
 0x1ee   : > { %v1556_v2 = vadd.f32 %v1555_v63, %v1554_v42 }
 0x1f0   : > { %v929_v5 = vadd.f32 %v1556_v2, %v2648_v49 }
 0x1f2   : > { %v979_v6 = vmax.f32 %v929_v5, 0.0 }
 0x1f4   : > { %1655 = vmatmul.mubr.f32.gmra.mrb[6].mxu1 %v979_v6 }
 0x1fa   : > { %v1557_v10 = vpop.f32.mrb[16].mxu0 }
 0x1fb   : > { %v1558_v12 = vpop.f32.mrb[17].mxu0 }
 0x1fc   : > { %v1559_v13 = vadd.f32 %v1558_v12, %v1557_v10 }
 0x1fe   : > { %v934_v8 = vadd.f32 %v1559_v13, %v2648_v49 }
 0x200   : > { %v980_v14 = vmax.f32 %v934_v8, 0.0 }
 0x202   : > { %1657 = vmatprep.mubr.f32.mxu1 %v980_v14 }
 0x204   : > { %v1560_v15 = vpop.f32.mrb[18].mxu0 }
 0x205   : > { %v1561_v1 = vpop.f32.mrb[19].mxu0 }
 0x206   : > { %v1562_v16 = vadd.f32 %v1561_v1, %v1560_v15 }
 0x208   : > { %v939_v3 = vadd.f32 %v1562_v16, %v2648_v49 }
 0x20a   : > { %v981_v17 = vmax.f32 %v939_v3, 0.0 }
 0x20c   : > { %1658 = vmatmul.mubr.f32.gmra.mrb[8].mxu1 %v981_v17 }
 0x212   : > { %v1563_v18 = vpop.f32.mrb[20].mxu0 }
 0x213   : > { %v1564_v44 = vpop.f32.mrb[21].mxu0 }
 0x214   : > { %v1565_v19 = vadd.f32 %v1564_v44, %v1563_v18 }
 0x216   : > { %v944_v7 = vadd.f32 %v1565_v19, %v2648_v49 }
 0x218   : > { %v982_v9 = vmax.f32 %v944_v7, 0.0 }
 0x21a   : > { %1660 = vmatprep.mubr.f32.mxu1 %v982_v9 }
 0x21c   : > { %v1566_v21 = vpop.f32.mrb[22].mxu0 }
 0x21d   : > { %v1567_v22 = vpop.f32.mrb[23].mxu0 }
 0x21e   : > { %v1568_v0 = vadd.f32 %v1567_v22, %v1566_v21 }
 0x220   : > { %v949_v23 = vadd.f32 %v1568_v0, %v2648_v49 }
 0x222   : > { %v983_v48 = vmax.f32 %v949_v23, 0.0 }
 0x224   : > { %1661 = vmatmul.mubr.f32.gmra.mrb[10].mxu1 %v983_v48 }
 0x22a   : > { %v1569_v24 = vpop.f32.mrb[24].mxu0 }
 0x22b   : > { %v1570_v25 = vpop.f32.mrb[25].mxu0 }
 0x22c   : > { %v1571_v26 = vadd.f32 %v1570_v25, %v1569_v24 }
 0x22e   : > { %v954_v11 = vadd.f32 %v1571_v26, %v2648_v49 }
 0x230   : > { %v984_v27 = vmax.f32 %v954_v11, 0.0 }
 0x232   : > { %1663 = vmatprep.mubr.f32.mxu1 %v984_v27 }
 0x234   : > { %v1572_v28 = vpop.f32.mrb[26].mxu0 }
 0x235   : > { %v1573_v38 = vpop.f32.mrb[27].mxu0 }
 0x236   : > { %v1574_v30 = vadd.f32 %v1573_v38, %v1572_v28 }
 0x238   : > { %v959_v31 = vadd.f32 %v1574_v30, %v2648_v49 }
 0x23a   : > { %v985_v32 = vmax.f32 %v959_v31, 0.0 }
 0x23c   : > { %1664 = vmatmul.mubr.f32.gmra.mrb[12].mxu1 %v985_v32 }
 0x242   : > { %v1575_v20 = vpop.f32.mrb[28].mxu0 }
 0x243   : > { %v1576_v33 = vpop.f32.mrb[29].mxu0 }
 0x244   : > { %v1577_v34 = vadd.f32 %v1576_v33, %v1575_v20 }
 0x246   : > { %v964_v35 = vadd.f32 %v1577_v34, %v2648_v49 }
 0x248   : > { %v986_v4 = vmax.f32 %v964_v35, 0.0 }
 0x24a   : > { %1666 = vmatprep.mubr.f32.mxu1 %v986_v4 }
 0x24c   : > { %v1578_v36 = vpop.f32.mrb[30].mxu0 }
 0x24d   : > { %v1579_v37 = vpop.f32.mrb[31].mxu0 }
 0x24e   : > { %v1580_v39 = vadd.f32 %v1579_v37, %v1578_v36 }
 0x250   : > { %v969_v40 = vadd.f32 %v1580_v39, %v2648_v49 }
 0x252   : > { %v987_v41 = vmax.f32 %v969_v40, 0.0 }
 0x254   : > { %1667 = vmatmul.mubr.f32.gmra.mrb[14].mxu1 %v987_v41 }
 0x29d   : > { %v1647_v45 = vpop.f32.mrb[0].mxu1 }
 0x29e   : > { %v1083_v46 = vadd.f32 %v1647_v45, %v1494_v43  ;;  %v1077_v47 = vpop.f32.mrb[1].mxu1 }
 0x29f   : > { %v1078_v50 = vadd.f32 %v1494_v43, %v1077_v47 }
 0x2a0   : > { %1158 = vmax.xlane.f32.xlu0 %v1083_v46 }
 0x2a1   : > { %1156 = vmax.xlane.f32.xlu1 %v1078_v50 }
 0x2a7   : > { %v1650_v51 = vpop.f32.mrb[2].mxu1 }
 0x2a8   : > { %v1093_v52 = vadd.f32 %v1650_v51, %v1494_v43  ;;  %v1087_v53 = vpop.f32.mrb[3].mxu1 }
 0x2a9   : > { %v1088_v54 = vadd.f32 %v1494_v43, %v1087_v53 }
 0x2aa   : > { %1162 = vmax.xlane.f32.xlu1 %v1093_v52 }
 0x2ab   : > { %1160 = vmax.xlane.f32.xlu0 %v1088_v54 }
 0x2b0   : > { %v1653_v55 = vpop.f32.mrb[4].mxu1 }
 0x2b1   : > { %v1103_v49 = vadd.f32 %v1653_v55, %v1494_v43  ;;  %v1097_v29 = vpop.f32.mrb[5].mxu1 }
 0x2b2   : > { %v1098_v56 = vadd.f32 %v1494_v43, %v1097_v29 }
 0x2b3   : > { %1166 = vmax.xlane.f32.xlu1 %v1103_v49 }
 0x2b4   : > { %1164 = vmax.xlane.f32.xlu0 %v1098_v56 }
 0x2c7   : > { %v1656_v57 = vpop.f32.mrb[6].mxu1 }
 0x2c8   : > { %v2669_v58 = vadd.f32 %v1656_v57, %v1494_v43  ;;  %v1107_v59 = vpop.f32.mrb[7].mxu1 }
 0x2c9   : > { %v2671_v60 = vadd.f32 %v1494_v43, %v1107_v59 }
 0x2ca   : > { %1170 = vmax.xlane.f32.xlu1 %v2669_v58 }
 0x2cb   : > { %1168 = vmax.xlane.f32.xlu0 %v2671_v60 }
 0x2df   : > { %v1659_v61 = vpop.f32.mrb[8].mxu1 }
 0x2e0   : > { %v2675_v62 = vadd.f32 %v1659_v61, %v1494_v43  ;;  %v1117_v42 = vpop.f32.mrb[9].mxu1 }
 0x2e1   : > { %v2677_v63 = vadd.f32 %v1494_v43, %v1117_v42 }
 0x2e2   : > { %1174 = vmax.xlane.f32.xlu1 %v2675_v62 }
 0x2e3   : > { %1172 = vmax.xlane.f32.xlu0 %v2677_v63 }
 0x2f7   : > { %v1662_v2 = vpop.f32.mrb[10].mxu1 }
 0x2f8   : > { %v2681_v5 = vadd.f32 %v1662_v2, %v1494_v43  ;;  %v1127_v6 = vpop.f32.mrb[11].mxu1 }
 0x2f9   : > { %v2683_v10 = vadd.f32 %v1494_v43, %v1127_v6 }
 0x2fa   : > { %1178 = vmax.xlane.f32.xlu1 %v2681_v5 }
 0x2fb   : > { %1176 = vmax.xlane.f32.xlu0 %v2683_v10 }
 0x30f   : > { %v1665_v12 = vpop.f32.mrb[12].mxu1 }
 0x310   : > { %v2687_v13 = vadd.f32 %v1665_v12, %v1494_v43  ;;  %v1137_v8 = vpop.f32.mrb[13].mxu1 }
 0x311   : > { %v2689_v14 = vadd.f32 %v1494_v43, %v1137_v8 }
 0x312   : > { %1182 = vmax.xlane.f32.xlu1 %v2687_v13 }
 0x313   : > { %1180 = vmax.xlane.f32.xlu0 %v2689_v14 }
 0x327   : > { %v1668_v15 = vpop.f32.mrb[14].mxu1 }
 0x328   : > { %v2693_v1 = vadd.f32 %v1668_v15, %v1494_v43  ;;  %v1147_v16 = vpop.f32.mrb[15].mxu1 }
 0x329   : > { %v2695_v3 = vadd.f32 %v1494_v43, %v1147_v16 }
 0x32a   : > { %1186 = vmax.xlane.f32.xlu1 %v2693_v1 }
 0x32b   : > { %1184 = vmax.xlane.f32.xlu0 %v2695_v3 }
 0x32d   : > { %v1159_v17 = vpop.xlane.xlu0 %1158 }
 0x32e   : > { %v2699_v18 = vsub.f32 %v1083_v46, %v1159_v17  ;;  %v1157_v44 = vpop.xlane.xlu1 %1156 }
 0x32f   : > { %v2701_v19 = vsub.f32 %v1078_v50, %v1157_v44 }
 0x330   : > { %v1206_v7 = vmul.f32 1.442695, %v2699_v18 }
 0x331   : > { %v1204_v9 = vmul.f32 1.442695, %v2701_v19 }
 0x332   : > { %1824 = vpow2.f32 %v1206_v7 }
 0x333   : > { %1826 = vpow2.f32 %v1204_v9 }
 0x337   : > { %v1163_v21 = vpop.xlane.xlu1 %1162 }
 0x338   : > { %v2705_v22 = vsub.f32 %v1093_v52, %v1163_v21  ;;  %v1161_v0 = vpop.xlane.xlu0 %1160 }
 0x339   : > { %v2707_v23 = vsub.f32 %v1088_v54, %v1161_v0 }
 0x33a   : > { %v1210_v48 = vmul.f32 1.442695, %v2705_v22 }
 0x33b   : > { %v1208_v24 = vmul.f32 1.442695, %v2707_v23 }
 0x33c   : > { %1828 = vpow2.f32 %v1210_v48  ;;  %v1825_v25 = vpop.eup %1824 }
 0x33d   : > { %1830 = vpow2.f32 %v1208_v24  ;;  %v1827_v26 = vpop.eup %1826  ;;  %1238 = vadd.xlane.f32.xlu1 %v1825_v25 }
 0x33e   : > { %1236 = vadd.xlane.f32.xlu0 %v1827_v26 }
 0x340   : > { %v1167_v11 = vpop.xlane.xlu1 %1166 }
 0x341   : > { %v2711_v27 = vsub.f32 %v1103_v49, %v1167_v11  ;;  %v1165_v28 = vpop.xlane.xlu0 %1164 }
 0x342   : > { %v2713_v38 = vsub.f32 %v1098_v56, %v1165_v28 }
 0x343   : > { %v1214_v31 = vmul.f32 1.442695, %v2711_v27 }
 0x344   : > { %v1212_v20 = vmul.f32 1.442695, %v2713_v38 }
 0x345   : > { %1832 = vpow2.f32 %v1214_v31 }
 0x346   : > { %v1829_v30 = vpop.eup %1828  ;;  %1834 = vpow2.f32 %v1212_v20 }
 0x347   : > { %v1831_v32 = vpop.eup %1830  ;;  %1242 = vadd.xlane.f32.xlu1 %v1829_v30 }
 0x348   : > { %1240 = vadd.xlane.f32.xlu0 %v1831_v32 }
 0x34f   : > { %v1833_v33 = vpop.eup %1832 }
 0x350   : > { %v1835_v34 = vpop.eup %1834  ;;  %1246 = vadd.xlane.f32.xlu1 %v1833_v33 }
 0x351   : > { %1244 = vadd.xlane.f32.xlu0 %v1835_v34 }
 0x357   : > { %v1171_v35 = vpop.xlane.xlu1 %1170 }
 0x358   : > { %v2718_v4 = vsub.f32 %v2669_v58, %v1171_v35  ;;  %v1169_v36 = vpop.xlane.xlu0 %1168 }
 0x359   : > { %v2721_v37 = vsub.f32 %v2671_v60, %v1169_v36 }
 0x35a   : > { %v1218_v39 = vmul.f32 1.442695, %v2718_v4 }
 0x35b   : > { %v1216_v40 = vmul.f32 1.442695, %v2721_v37 }
 0x35c   : > { %1836 = vpow2.f32 %v1218_v39 }
 0x35d   : > { %1838 = vpow2.f32 %v1216_v40 }
 0x366   : > { %v1837_v41 = vpop.eup %1836 }
 0x367   : > { %v1839_v43 = vpop.eup %1838  ;;  %1250 = vadd.xlane.f32.xlu1 %v1837_v41 }
 0x368   : > { %1248 = vadd.xlane.f32.xlu0 %v1839_v43 }
 0x36f   : > { %v1175_v45 = vpop.xlane.xlu1 %1174 }
 0x370   : > { %v2726_v46 = vsub.f32 %v2675_v62, %v1175_v45  ;;  %v1173_v47 = vpop.xlane.xlu0 %1172 }
 0x371   : > { %v2729_v50 = vsub.f32 %v2677_v63, %v1173_v47 }
 0x372   : > { %v1222_v51 = vmul.f32 1.442695, %v2726_v46 }
 0x373   : > { %v1220_v52 = vmul.f32 1.442695, %v2729_v50 }
 0x374   : > { %1840 = vpow2.f32 %v1222_v51 }
 0x375   : > { %1842 = vpow2.f32 %v1220_v52 }
 0x37e   : > { %v1841_v53 = vpop.eup %1840 }
 0x37f   : > { %v1843_v54 = vpop.eup %1842  ;;  %1254 = vadd.xlane.f32.xlu1 %v1841_v53 }
 0x380   : > { %1252 = vadd.xlane.f32.xlu0 %v1843_v54 }
 0x387   : > { %v1179_v55 = vpop.xlane.xlu1 %1178 }
 0x388   : > { %v2734_v49 = vsub.f32 %v2681_v5, %v1179_v55  ;;  %v1177_v29 = vpop.xlane.xlu0 %1176 }
 0x389   : > { %v2737_v56 = vsub.f32 %v2683_v10, %v1177_v29 }
 0x38a   : > { %v1226_v57 = vmul.f32 1.442695, %v2734_v49 }
 0x38b   : > { %v1224_v58 = vmul.f32 1.442695, %v2737_v56 }
 0x38c   : > { %1844 = vpow2.f32 %v1226_v57 }
 0x38d   : > { %1846 = vpow2.f32 %v1224_v58 }
 0x396   : > { %v1845_v59 = vpop.eup %1844 }
 0x397   : > { %v1847_v60 = vpop.eup %1846  ;;  %1258 = vadd.xlane.f32.xlu1 %v1845_v59 }
 0x398   : > { %1256 = vadd.xlane.f32.xlu0 %v1847_v60 }
 0x39f   : > { %v1183_v61 = vpop.xlane.xlu1 %1182 }
 0x3a0   : > { %v2742_v62 = vsub.f32 %v2687_v13, %v1183_v61  ;;  %v1181_v42 = vpop.xlane.xlu0 %1180 }
 0x3a1   : > { %v2745_v63 = vsub.f32 %v2689_v14, %v1181_v42 }
 0x3a2   : > { %v1230_v2 = vmul.f32 1.442695, %v2742_v62 }
 0x3a3   : > { %v1228_v5 = vmul.f32 1.442695, %v2745_v63 }
 0x3a4   : > { %1848 = vpow2.f32 %v1230_v2 }
 0x3a5   : > { %1850 = vpow2.f32 %v1228_v5 }
 0x3ae   : > { %v1849_v6 = vpop.eup %1848 }
 0x3af   : > { %v1851_v10 = vpop.eup %1850  ;;  %1262 = vadd.xlane.f32.xlu1 %v1849_v6 }
 0x3b0   : > { %1260 = vadd.xlane.f32.xlu0 %v1851_v10 }
 0x3b7   : > { %v1187_v12 = vpop.xlane.xlu1 %1186 }
 0x3b8   : > { %v2750_v8 = vsub.f32 %v2693_v1, %v1187_v12  ;;  %v1185_v13 = vpop.xlane.xlu0 %1184 }
 0x3b9   : > { %v2753_v15 = vsub.f32 %v2695_v3, %v1185_v13 }
 0x3ba   : > { %v1234_v14 = vmul.f32 1.442695, %v2750_v8 }
 0x3bb   : > { %v1232_v16 = vmul.f32 1.442695, %v2753_v15 }
 0x3bc   : > { %1852 = vpow2.f32 %v1234_v14 }
 0x3bd   : > { %1854 = vpow2.f32 %v1232_v16 }
 0x3c6   : > { %v1853_v17 = vpop.eup %1852 }
 0x3c7   : > { %v1855_v44 = vpop.eup %1854  ;;  %1266 = vadd.xlane.f32.xlu1 %v1853_v17 }
 0x3c8   : > { %1264 = vadd.xlane.f32.xlu0 %v1855_v44 }
 0x3ca   : > { %v1239_v7 = vpop.xlane.xlu1 %1238 }
 0x3cb   : > { %1856 = vlog2.f32 %v1239_v7  ;;  %v1237_v9 = vpop.xlane.xlu0 %1236 }
 0x3cc   : > { %1858 = vlog2.f32 %v1237_v9 }
 0x3d4   : > { %v1243_v1 = vpop.xlane.xlu1 %1242 }
 0x3d5   : > { %1860 = vlog2.f32 %v1243_v1  ;;  %v1241_v3 = vpop.xlane.xlu0 %1240  ;;  %v1857_v21 = vpop.eup %1856 }
 0x3d6   : > { %1862 = vlog2.f32 %v1241_v3  ;;  %v1859_v0 = vpop.eup %1858  ;;  %v1271_v48 = vmul.f32 0.6931472, %v1857_v21 }
 0x3d7   : > { %v1269_v24 = vmul.f32 0.6931472, %v1859_v0 }
 0x3d8   : > { %v1301_v25 = vsub.f32 %v2699_v18, %v1271_v48 }
 0x3d9   : > { %v1300_v26 = vsub.f32 %v2701_v19, %v1269_v24 }
 0x3da   : > { %1317 = vst [vmem:[%s2762_s25 + $0x8] sm:$0xff] %v1301_v25 }
 0x3db   : > { %1316 = vst [vmem:[%s2762_s25] sm:$0xff] %v1300_v26 }
 0x3dd   : > { %v1247_v31 = vpop.xlane.xlu1 %1246 }
 0x3de   : > { %1864 = vlog2.f32 %v1247_v31  ;;  %v1245_v20 = vpop.xlane.xlu0 %1244 }
 0x3df   : > { %v1861_v11 = vpop.eup %1860  ;;  %1866 = vlog2.f32 %v1245_v20 }
 0x3e0   : > { %v1863_v28 = vpop.eup %1862  ;;  %v1275_v30 = vmul.f32 0.6931472, %v1861_v11 }
 0x3e1   : > { %v1273_v32 = vmul.f32 0.6931472, %v1863_v28 }
 0x3e2   : > { %v1303_v18 = vsub.f32 %v2705_v22, %v1275_v30 }
 0x3e3   : > { %v1302_v19 = vsub.f32 %v2707_v23, %v1273_v32 }
 0x3e4   : > { %1319 = vst [vmem:[%s2762_s25 + $0x18] sm:$0xff] %v1303_v18 }
 0x3e5   : > { %1318 = vst [vmem:[%s2762_s25 + $0x10] sm:$0xff] %v1302_v19 }
 0x3e8   : > { %v1865_v33 = vpop.eup %1864 }
 0x3e9   : > { %v1867_v34 = vpop.eup %1866  ;;  %v1279_v35 = vmul.f32 0.6931472, %v1865_v33 }
 0x3ea   : > { %v1277_v36 = vmul.f32 0.6931472, %v1867_v34 }
 0x3eb   : > { %v1305_v39 = vsub.f32 %v2711_v27, %v1279_v35 }
 0x3ec   : > { %v1304_v40 = vsub.f32 %v2713_v38, %v1277_v36 }
 0x3ed   : > { %1321 = vst [vmem:[%s2762_s25 + $0x28] sm:$0xff] %v1305_v39 }
 0x3ee   : > { %1320 = vst [vmem:[%s2762_s25 + $0x20] sm:$0xff] %v1304_v40 }
 0x3f4   : > { %v1251_v41 = vpop.xlane.xlu1 %1250 }
 0x3f5   : > { %1868 = vlog2.f32 %v1251_v41  ;;  %v1249_v22 = vpop.xlane.xlu0 %1248 }
 0x3f6   : > { %1870 = vlog2.f32 %v1249_v22 }
 0x3ff   : > { %v1869_v43 = vpop.eup %1868 }
 0x400   : > { %v1871_v23 = vpop.eup %1870  ;;  %v1283_v45 = vmul.f32 0.6931472, %v1869_v43 }
 0x401   : > { %v1281_v47 = vmul.f32 0.6931472, %v1871_v23 }
 0x402   : > { %v1307_v51 = vsub.f32 %v2718_v4, %v1283_v45 }
 0x403   : > { %v1306_v52 = vsub.f32 %v2721_v37, %v1281_v47 }
 0x404   : > { %1323 = vst [vmem:[%s2762_s25 + $0x38] sm:$0xff] %v1307_v51 }
 0x405   : > { %1322 = vst [vmem:[%s2762_s25 + $0x30] sm:$0xff] %v1306_v52 }
 0x40c   : > { %v1255_v27 = vpop.xlane.xlu1 %1254 }
 0x40d   : > { %1872 = vlog2.f32 %v1255_v27  ;;  %v1253_v38 = vpop.xlane.xlu0 %1252 }
 0x40e   : > { %1874 = vlog2.f32 %v1253_v38 }
 0x417   : > { %v1873_v53 = vpop.eup %1872 }
 0x418   : > { %v1875_v54 = vpop.eup %1874  ;;  %v1287_v55 = vmul.f32 0.6931472, %v1873_v53 }
 0x419   : > { %v1285_v29 = vmul.f32 0.6931472, %v1875_v54 }
 0x41a   : > { %v1309_v57 = vsub.f32 %v2726_v46, %v1287_v55 }
 0x41b   : > { %v1308_v58 = vsub.f32 %v2729_v50, %v1285_v29 }
 0x41c   : > { %1325 = vst [vmem:[%s2762_s25 + $0x48] sm:$0xff] %v1309_v57 }
 0x41d   : > { %1324 = vst [vmem:[%s2762_s25 + $0x40] sm:$0xff] %v1308_v58 }
 0x424   : > { %v1259_v4 = vpop.xlane.xlu1 %1258 }
 0x425   : > { %1876 = vlog2.f32 %v1259_v4  ;;  %v1257_v37 = vpop.xlane.xlu0 %1256 }
 0x426   : > { %1878 = vlog2.f32 %v1257_v37 }
 0x42f   : > { %v1877_v59 = vpop.eup %1876 }
 0x430   : > { %v1879_v60 = vpop.eup %1878  ;;  %v1291_v61 = vmul.f32 0.6931472, %v1877_v59 }
 0x431   : > { %v1289_v42 = vmul.f32 0.6931472, %v1879_v60 }
 0x432   : > { %v1311_v2 = vsub.f32 %v2734_v49, %v1291_v61 }
 0x433   : > { %v1310_v5 = vsub.f32 %v2737_v56, %v1289_v42 }
 0x434   : > { %1327 = vst [vmem:[%s2762_s25 + $0x58] sm:$0xff] %v1311_v2 }
 0x435   : > { %1326 = vst [vmem:[%s2762_s25 + $0x50] sm:$0xff] %v1310_v5 }
 0x43c   : > { %v1263_v46 = vpop.xlane.xlu1 %1262 }
 0x43d   : > { %1880 = vlog2.f32 %v1263_v46  ;;  %v1261_v50 = vpop.xlane.xlu0 %1260 }
 0x43e   : > { %1882 = vlog2.f32 %v1261_v50 }
 0x447   : > { %v1881_v6 = vpop.eup %1880 }
 0x448   : > { %v1883_v10 = vpop.eup %1882  ;;  %v1295_v12 = vmul.f32 0.6931472, %v1881_v6 }
 0x449   : > { %v1293_v13 = vmul.f32 0.6931472, %v1883_v10 }
 0x44a   : > { %v1313_v14 = vsub.f32 %v2742_v62, %v1295_v12 }
 0x44b   : > { %v1312_v16 = vsub.f32 %v2745_v63, %v1293_v13 }
 0x44c   : > { %1329 = vst [vmem:[%s2762_s25 + $0x68] sm:$0xff] %v1313_v14 }
 0x44d   : > { %1328 = vst [vmem:[%s2762_s25 + $0x60] sm:$0xff] %v1312_v16 }
 0x454   : > { %v1267_v49 = vpop.xlane.xlu1 %1266 }
 0x455   : > { %1884 = vlog2.f32 %v1267_v49  ;;  %v1265_v56 = vpop.xlane.xlu0 %1264 }
 0x456   : > { %1886 = vlog2.f32 %v1265_v56 }
 0x45f   : > { %v1885_v17 = vpop.eup %1884 }
 0x460   : > { %v1887_v44 = vpop.eup %1886  ;;  %v1299_v7 = vmul.f32 0.6931472, %v1885_v17 }
 0x461   : > { %v1297_v9 = vmul.f32 0.6931472, %v1887_v44 }
 0x462   : > { %v1315_v62 = vsub.f32 %v2750_v8, %v1299_v7 }
 0x463   : > { %v1314_v63 = vsub.f32 %v2753_v15, %v1297_v9 }
 0x464   : > { %1331 = vst [vmem:[%s2762_s25 + $0x78] sm:$0xff] %v1315_v62 }
 0x465   : > { %1330 = vst [vmem:[%s2762_s25 + $0x70] sm:$0xff] %v1314_v63 }
 0x466   : > { %1929 = shalt.err (!%p1926_p7)
}
 0x467   : > { %s1930_s30 = scalar_lea.hbm %s2796_s9, 2048  ;;  %s1934_s16 = scalar_lea.hbm %s2851_s5, 4096 }
 0x468   : > { %p1931_p8 = scmp.ne.s32.totalorder %s2796_s9, %s1930_s30  ;;  %p1935_p1 = scmp.lt.u32.totalorder %s2796_s9, %s2851_s5 }
 0x469   : > { %p1936_p0 = scmp.lt.u32.totalorder %s1934_s16, %s1930_s30  ;;  %p1938_p6 = scmp.lt.u32.totalorder %s1930_s30, %s2796_s9 }
 0x46a   : > { %p1932_p11 = pnand %p1931_p8, %p2913_p9 }
 0x46b   : > { %p1937_p5 = por %p1936_p0, %p1935_p1 }
 0x46c   : > { %p1933_p13 = pneg %p1932_p11 }
 0x46d   : > { %p1939_p10 = por %p1938_p6, %p1937_p5 }
 0x46f   : > { %p1940_p12 = pnand %p1939_p10, %p1933_p13 }
 0x471   : > { %1943 = shalt.err (!%p1940_p12)
}
 0x472   : > { %s1991_s25 = smov 128   ;;  %s1992_s26 = smov 8  }
 0x473   : > { %1737 = dma.vmem_to_hbm [thread:$0]  (%p2913_p9), %s2798_s6, 2048, %s2796_s9, %s2805_s22, %s1991_s25, %s1991_s25, %s1992_s26  }
 0x474 PF: > { %p1749_p2 = scmp.ge.s32.totalorder %s1982_s21, 2  ;;  %s1361_s8 = sand.u32 1, %s1970_s18  }
 0x475   : > { %p2914_p3 = scmp.ne.s32.totalorder %s2856_s29, 0  ;;  %s1362_s7 = scalar_lea.sflag [#allocation4], %s1361_s8 }
 0x477   : > { %p1744_p4 = pnand %p1749_p2, %p2914_p3 }
 0x479   : > { %1965 = dma.done.wait (!%p1744_p4), %s1362_s7, 2048  }
 0x47a   : > { %1967 = vsyncadd (!%p1744_p4), %s1362_s7, 4294965248  ;;  %p16_p7 = scmp.ge.s32.totalorder %s2048_s24, 4   ;;  %s2915_s18 = smov %s1974_s19 }
 0x47b   : > { %s2916_s19 = smov %s1978_s20  ;;  %s2917_s20 = smov %s2059_s27 }
 0x47c   : > { %s2918_s21 = smov %s2048_s24  ;;  %18 = sbr.rel (!%p16_p7) target bundleno = 4 (0x4), region = 80 }
 0x483   :  { %1367 = vsyncpa [#allocation3], 1 }
 0x484   :  { %1369 = vsyncpa [#allocation3 + $0x1], 1 }
 0x485   :  { %1370 = vsyncpa [#allocation4], 1 }
 0x486   :  { %1372 = vsyncpa [#allocation4 + $0x1], 1 }

</bundles_post_ra>
